<compile_context>
chip_gen: v7x
topology: tpu7x:2x2x1
jax: 0.10.0
libtpu: 0.0.40
codegen_flags: <defaults>
</compile_context>

<pallas_src>
import functools

import jax
import jax.numpy as jnp
from jax.experimental import pallas as pl
from jax.experimental.pallas import tpu as pltpu


# ---------------------------------------------------------------------------
# tiling helpers
# ---------------------------------------------------------------------------

_MAX_TM = 512           # v7x (64 MiB VMEM) safe cap; v5e/v6e could use 1024.
_RESIDENT_W_BYTES = 8 << 20   # keep weight fully resident in VMEM below this.


def _round_up(x, m):
    return (x + m - 1) // m * m


def _choose_m_tiling(m):
    """Return (padded_M, tile_M).

    Tiles are multiples of 16 (bf16 sublane pack) and, whenever M allows it,
    the 'parallel' M axis gets at least two tiles so v7x megacore can split
    the grid across its two TensorCores.  tm is capped at _MAX_TM to stay
    inside v7x's 64 MiB VMEM even with resident weights.
    """
    mp = _round_up(max(m, 16), 16)
    if mp <= 16:
        return mp, mp                      # too small to split
    if mp >= 2 * _MAX_TM:
        tm = _MAX_TM
    else:
        tm = _round_up((mp + 1) // 2, 16)  # ~two equal, 16-aligned tiles
    return _round_up(mp, tm), tm


def _choose_k_tile(kp):
    for tk in (512, 256, 128):
        if kp % tk == 0:
            return tk
    return kp                              # unreachable: kp is a multiple of 128


# ---------------------------------------------------------------------------
# Pallas kernel: out = act(patches @ W (+ bias)), plus per-tile BN partials
# ---------------------------------------------------------------------------

def _conv_kernel(*refs, n_k, tk, has_bias, has_stats, apply_act,
                 resident_w, negative_slope):
    """One (M-tile, K-tile) step.

    grid = (M_tiles, K_tiles); K (last, 'arbitrary') is the reduction axis.
    The f32 VMEM accumulator is written with the first partial product (plus
    bias) at k==0 and the epilogue (stats / activation / cast) runs at the
    last k step.  When `resident_w` the weight ref holds the full (Kp, Cp)
    matrix (constant block index => single DMA per layer) and the K tile is
    sliced in-kernel.
    """
    it = iter(refs)
    a_ref = next(it)                         # (tm, tk)  bf16 patches
    w_ref = next(it)                         # (Kp, Cp) resident or (tk, Cp)
    b_ref = next(it) if has_bias else None   # (1, Cp)   f32 bias
    o_ref = next(it)                         # (tm, Cp)  bf16/f32 output
    stats_ref = next(it) if has_stats else None   # (1, 2, Cp) f32 partials
    acc_ref = next(it)                       # (tm, Cp)  f32 scratch

    k = pl.program_id(1)

    if resident_w:
        k0 = pl.multiple_of(k * tk, 128)
        w_k = w_ref[pl.ds(k0, tk), :]
    else:
        w_k = w_ref[...]

    partial = jnp.dot(a_ref[...], w_k, preferred_element_type=jnp.float32)

    @pl.when(k == 0)
    def _init():
        if has_bias:
            acc_ref[...] = partial + b_ref[...]
        else:
            acc_ref[...] = partial

    @pl.when(k > 0)
    def _accumulate():
        acc_ref[...] += partial

    @pl.when(k == n_k - 1)
    def _finalize():
        y = acc_ref[...]
        if has_stats:
            # Padded M rows are all-zero patches with no bias -> contribute 0,
            # so dividing by the true M outside the kernel is exact.
            stats_ref[0, 0:1, :] = jnp.sum(y, axis=0, keepdims=True)
            stats_ref[0, 1:2, :] = jnp.sum(y * y, axis=0, keepdims=True)
        if apply_act:
            y = jnp.where(y >= 0.0, y, negative_slope * y)
        o_ref[...] = y.astype(o_ref.dtype)


def conv_layer_pallas(patches, w2d, bias, *, tm, tk, out_dtype, apply_act,
                      compute_stats, negative_slope=0.2):
    """patches: (Mp, Kp) bf16, w2d: (Kp, Cp) bf16, bias: (Cp,) f32 or None."""
    Mp, Kp = patches.shape
    Cp = w2d.shape[1]
    assert Mp % tm == 0 and Kp % tk == 0 and Cp % 128 == 0
    grid_m, n_k = Mp // tm, Kp // tk
    grid = (grid_m, n_k)

    w_bytes = Kp * Cp * 2
    resident_w = w_bytes <= _RESIDENT_W_BYTES

    in_specs = [pl.BlockSpec((tm, tk), lambda i, k: (i, k))]
    inputs = [patches]
    if resident_w:
        # Whole weight resident in VMEM (constant block index => one DMA).
        in_specs.append(pl.BlockSpec((Kp, Cp), lambda i, k: (0, 0)))
    else:
        in_specs.append(pl.BlockSpec((tk, Cp), lambda i, k: (k, 0)))
    inputs.append(w2d)

    has_bias = bias is not None
    if has_bias:
        in_specs.append(pl.BlockSpec((1, Cp), lambda i, k: (0, 0)))
        inputs.append(bias.reshape(1, Cp).astype(jnp.float32))

    out_shapes = [jax.ShapeDtypeStruct((Mp, Cp), out_dtype)]
    out_specs = [pl.BlockSpec((tm, Cp), lambda i, k: (i, 0))]
    if compute_stats:
        out_shapes.append(jax.ShapeDtypeStruct((grid_m, 2, Cp), jnp.float32))
        out_specs.append(pl.BlockSpec((1, 2, Cp), lambda i, k: (i, 0, 0)))

    # Explicit VMEM budget (double-buffered inputs/outputs + f32 accumulator),
    # with headroom; stays well below v7x's 64 MiB physical VMEM.
    out_bytes = jnp.dtype(out_dtype).itemsize
    est = (2 * tm * tk * 2
           + (2 * w_bytes if resident_w else 2 * tk * Cp * 2)
           + 2 * tm * Cp * out_bytes
           + tm * Cp * 4
           + (2 * 2 * Cp * 4 if compute_stats else 0)
           + (2 * Cp * 4 if has_bias else 0))
    vmem_limit = int(min(64 << 20, max(32 << 20, int(est * 1.5))))

    kernel = functools.partial(
        _conv_kernel, n_k=n_k, tk=tk, has_bias=has_bias,
        has_stats=compute_stats, apply_act=apply_act,
        resident_w=resident_w, negative_slope=negative_slope)

    result = pl.pallas_call(
        kernel,
        out_shape=tuple(out_shapes),
        grid=grid,
        in_specs=in_specs,
        out_specs=tuple(out_specs),
        scratch_shapes=[pltpu.VMEM((tm, Cp), jnp.float32)],
        compiler_params=pltpu.CompilerParams(
            dimension_semantics=("parallel", "arbitrary"),
            vmem_limit_bytes=vmem_limit),
    )(*inputs)

    if compute_stats:
        return result            # (y2d, stats(grid_m, 2, Cp))
    return result[0]


# ---------------------------------------------------------------------------
# JAX glue: channels-last im2col + weight reordering (layout only)
# ---------------------------------------------------------------------------

def _leaky_relu(x, slope):
    return jnp.where(x >= 0.0, x, slope * x)


def _im2col_nhwc(x_nhwc, k, s, pad):
    """NHWC activation -> (N*OH*OW, k*k*C) patches, K ordered (kh, kw, c)."""
    N, H, W, C = x_nhwc.shape
    xp = jnp.pad(x_nhwc, ((0, 0), (pad, pad), (pad, pad), (0, 0)))
    Hp, Wp = H + 2 * pad, W + 2 * pad
    OH = (Hp - k) // s + 1
    OW = (Wp - k) // s + 1
    cols = []
    for kh in range(k):
        for kw in range(k):
            cols.append(xp[:, kh:kh + s * OH:s, kw:kw + s * OW:s, :])
    p = jnp.stack(cols, axis=3)                       # (N, OH, OW, k*k, C)
    return p.reshape(N * OH * OW, k * k * C), (N, OH, OW)


def _prep_weight_bf16(w, Kp, Cp):
    """(Cout, Cin, KH, KW) -> zero-padded bf16 (Kp, Cp); K ordered (kh,kw,cin)
    to match the channels-last im2col layout."""
    Cout, Cin, KH, KW = w.shape
    K = Cin * KH * KW
    w2d = jnp.transpose(w, (2, 3, 1, 0)).reshape(K, Cout)
    w2d = jnp.pad(w2d, ((0, Kp - K), (0, Cp - Cout)))
    return w2d.astype(jnp.bfloat16)


# ---------------------------------------------------------------------------
# NLayerDiscriminator (input_nc, ndf, n_layers; use_actnorm=False => BatchNorm)
# ---------------------------------------------------------------------------

def make_layer_configs(input_nc, ndf, n_layers):
    """List of dicts: {cin, cout, stride, use_bias, use_bn, use_act}."""
    cfgs = [dict(cin=input_nc, cout=ndf, stride=2,
                 use_bias=True, use_bn=False, use_act=True)]
    nf_mult = 1
    for n in range(1, n_layers):
        nf_mult_prev, nf_mult = nf_mult, min(2 ** n, 8)
        cfgs.append(dict(cin=ndf * nf_mult_prev, cout=ndf * nf_mult, stride=2,
                         use_bias=False, use_bn=True, use_act=True))
    nf_mult_prev, nf_mult = nf_mult, min(2 ** n_layers, 8)
    cfgs.append(dict(cin=ndf * nf_mult_prev, cout=ndf * nf_mult, stride=1,
                     use_bias=False, use_bn=True, use_act=True))
    cfgs.append(dict(cin=ndf * nf_mult, cout=1, stride=1,
                     use_bias=True, use_bn=False, use_act=False))
    return cfgs


def init_params(key, cfgs, kernel_size=4):
    """Synthetic weights_init: conv W ~ N(0, 0.02), conv b = 0, BN gamma=1, beta=0."""
    params = []
    for i, c in enumerate(cfgs):
        w = 0.02 * jax.random.normal(
            jax.random.fold_in(key, i),
            (c["cout"], c["cin"], kernel_size, kernel_size), jnp.float32)
        b = jnp.zeros((c["cout"],), jnp.float32)
        gamma = jnp.ones((c["cout"],), jnp.float32) if c["use_bn"] else None
        beta = jnp.zeros((c["cout"],), jnp.float32) if c["use_bn"] else None
        params.append(dict(w=w, b=b, gamma=gamma, beta=beta))
    return params


def nlayer_discriminator_forward(x_nchw, cfgs, params, kernel_size=4, padw=1,
                                 eps=1e-5, negative_slope=0.2):
    # NCHW -> NHWC once; bf16 between layers; back to NCHW f32 at the output.
    h = jnp.transpose(x_nchw, (0, 2, 3, 1)).astype(jnp.bfloat16)
    pending = None        # lazily-applied (scale, shift) of the previous BN layer
    last = len(cfgs) - 1
    for li, (c, p) in enumerate(zip(cfgs, params)):
        cout = c["cout"]

        if pending is not None:
            # BN(training) needs global stats, so it cannot be fused into the
            # producing conv; apply the normalize + LeakyReLU here so XLA fuses
            # it into the consumer's im2col (no extra HBM round trip, and conv
            # padding zeros are added *after* the activation, as in PyTorch).
            scale, shift = pending
            h = _leaky_relu(h.astype(jnp.float32) * scale + shift,
                            negative_slope).astype(jnp.bfloat16)

        # TODO(synk): fuse im2col into the conv kernel (manual DMA over the padded
        # NHWC activation, building (tm, 16*Cin) tiles in VMEM) to remove the
        # 4-16x patch blow-up through HBM entirely.
        patches, (N, OH, OW) = _im2col_nhwc(h, kernel_size, c["stride"], padw)
        M, K = patches.shape
        Kp = _round_up(K, 128)
        tk = _choose_k_tile(Kp)
        Cp = _round_up(cout, 128)          # lane-dense outputs (incl. final Cout=1)
        Mp, tm = _choose_m_tiling(M)
        patches = jnp.pad(patches, ((0, Mp - M), (0, Kp - K)))

        w2d = _prep_weight_bf16(p["w"], Kp, Cp)
        bias = jnp.pad(p["b"], (0, Cp - cout)) if c["use_bias"] else None

        out_dtype = jnp.float32 if li == last else jnp.bfloat16
        fuse_act = c["use_act"] and not c["use_bn"]   # act fused into conv if no BN

        res = conv_layer_pallas(
            patches, w2d, bias, tm=tm, tk=tk, out_dtype=out_dtype,
            apply_act=fuse_act, compute_stats=c["use_bn"],
            negative_slope=negative_slope)

        if c["use_bn"]:
            y2d, stats = res
            ssum = jnp.sum(stats, axis=0)                       # (2, Cp) f32
            mean = ssum[0] / M                                  # over N*OH*OW
            var = jnp.maximum(ssum[1] / M - mean * mean, 0.0)   # biased variance
            inv_std = jax.lax.rsqrt(var + eps)
            gamma = jnp.pad(p["gamma"], (0, Cp - cout))
            beta = jnp.pad(p["beta"], (0, Cp - cout))
            scale = (gamma * inv_std)[:cout]
            shift = (beta - mean * gamma * inv_std)[:cout]
            pending = (scale, shift)
        else:
            y2d = res
            pending = None

        h = y2d[:M, :cout].reshape(N, OH, OW, cout)   # drop M/Cout padding

    # Final layer has no BN/act, so nothing is pending here.
    return jnp.transpose(h, (0, 3, 1, 2)).astype(jnp.float32)


# ---------------------------------------------------------------------------
# main
# ---------------------------------------------------------------------------

if __name__ == "__main__":
    # Small config consistent with the module: input_nc=3, ndf=8, n_layers=3.
    # Spatial 32 so all 5 convs (3x stride-2 + 2x stride-1, k=4, p=1) stay valid.
    input_nc, ndf, n_layers = 3, 8, 3
    N, H, W = 2, 32, 32

    key = jax.random.PRNGKey(0)
    x = jax.random.normal(jax.random.fold_in(key, 123),
                          (N, input_nc, H, W), jnp.float32)

    cfgs = make_layer_configs(input_nc, ndf, n_layers)
    params = init_params(jax.random.fold_in(key, 7), cfgs)

    fwd = jax.jit(lambda xx, pp: nlayer_discriminator_forward(xx, cfgs, pp))
    out = jax.block_until_ready(fwd(x, params))

    # PatchGAN output: (N, 1, H', W') single-channel patch logits.
    assert out.shape[0] == N and out.shape[1] == 1, out.shape
    assert bool(jnp.all(jnp.isfinite(out)))

    print("KERNEL_OK")
</pallas_src>

<mosaic_0001>
module attributes {stable_mosaic.version = 11 : i64} {
  func.func @_conv_kernel(%arg0: i32, %arg1: i32, %arg2: memref<256x128xbf16, #tpu.memory_space<vmem>>, %arg3: memref<128x128xbf16, #tpu.memory_space<vmem>>, %arg4: memref<1x128xf32, #tpu.memory_space<vmem>>, %arg5: memref<256x128xbf16, #tpu.memory_space<vmem>>, %arg6: memref<256x128xf32, #tpu.memory_space<vmem>>) attributes {dimension_semantics = [#tpu.dimension_semantics<parallel>, #tpu.dimension_semantics<arbitrary>], iteration_bounds = array<i64: 2, 1>, scalar_prefetch = 0 : i64, scratch_operands = 1 : i64, tpu.core_type = #tpu.core_type<tc>, window_params = [{transform_indices = @transform_0, window_bounds = array<i64: 256, 128>}, {pipeline_mode = #tpu.pipeline_mode<synchronous>, transform_indices = @transform_1, window_bounds = array<i64: 128, 128>}, {pipeline_mode = #tpu.pipeline_mode<synchronous>, transform_indices = @transform_2, window_bounds = array<i64: 1, 128>}, {transform_indices = @transform_3, window_bounds = array<i64: 256, 128>}]} {
    %c128_i32 = arith.constant 128 : i32
    %0 = arith.muli %arg1, %c128_i32 : i32
    %1 = tpu.assume_multiple %0, 128 : i32
    %2 = arith.index_cast %1 : i32 to index
    %c0 = arith.constant 0 : index
    %3 = vector.load %arg3[%2, %c0] : memref<128x128xbf16, #tpu.memory_space<vmem>>, vector<128x128xbf16>
    %c0_0 = arith.constant 0 : index
    %c0_1 = arith.constant 0 : index
    %4 = vector.load %arg2[%c0_0, %c0_1] : memref<256x128xbf16, #tpu.memory_space<vmem>>, vector<256x128xbf16>
    %cst = arith.constant dense<0.000000e+00> : vector<256x128xf32>
    %5 = tpu.matmul %4, %3, %cst {dimension_numbers = #tpu.dot_dimension_numbers<[1], [0], [0], [1], [0, 0, 1, 1], [], []>} : vector<256x128xbf16>, vector<128x128xbf16>, vector<256x128xf32> -> vector<256x128xf32>
    %c0_i32 = arith.constant 0 : i32
    %6 = arith.cmpi eq, %arg1, %c0_i32 : i32
    %7 = arith.extui %6 : i1 to i32
    %c0_i32_2 = arith.constant 0 : i32
    %8 = arith.cmpi ne, %7, %c0_i32_2 : i32
    scf.if %8 {
      %c0_7 = arith.constant 0 : index
      %c0_8 = arith.constant 0 : index
      %15 = vector.load %arg4[%c0_7, %c0_8] : memref<1x128xf32, #tpu.memory_space<vmem>>, vector<1x128xf32>
      %16 = vector.broadcast %15 : vector<1x128xf32> to vector<256x128xf32>
      %17 = arith.addf %5, %16 : vector<256x128xf32>
      %c0_9 = arith.constant 0 : index
      %c0_10 = arith.constant 0 : index
      %18 = vector.load %arg6[%c0_9, %c0_10] : memref<256x128xf32, #tpu.memory_space<vmem>>, vector<256x128xf32>
      tpu.vector_store %arg6[%c0_9, %c0_10], %17 {strides = array<i32>} : memref<256x128xf32, #tpu.memory_space<vmem>>, vector<256x128xf32>,
    } else {
    }
    %c0_i32_3 = arith.constant 0 : i32
    %9 = arith.cmpi sgt, %arg1, %c0_i32_3 : i32
    %10 = arith.extui %9 : i1 to i32
    %c0_i32_4 = arith.constant 0 : i32
    %11 = arith.cmpi ne, %10, %c0_i32_4 : i32
    scf.if %11 {
      %c0_7 = arith.constant 0 : index
      %c0_8 = arith.constant 0 : index
      %15 = vector.load %arg6[%c0_7, %c0_8] : memref<256x128xf32, #tpu.memory_space<vmem>>, vector<256x128xf32>
      %16 = arith.addf %15, %5 : vector<256x128xf32>
      %c0_9 = arith.constant 0 : index
      %c0_10 = arith.constant 0 : index
      %17 = vector.load %arg6[%c0_9, %c0_10] : memref<256x128xf32, #tpu.memory_space<vmem>>, vector<256x128xf32>
      tpu.vector_store %arg6[%c0_9, %c0_10], %16 {strides = array<i32>} : memref<256x128xf32, #tpu.memory_space<vmem>>, vector<256x128xf32>,
    } else {
    }
    %c0_i32_5 = arith.constant 0 : i32
    %12 = arith.cmpi eq, %arg1, %c0_i32_5 : i32
    %13 = arith.extui %12 : i1 to i32
    %c0_i32_6 = arith.constant 0 : i32
    %14 = arith.cmpi ne, %13, %c0_i32_6 : i32
    scf.if %14 {
      %c0_7 = arith.constant 0 : index
      %c0_8 = arith.constant 0 : index
      %15 = vector.load %arg6[%c0_7, %c0_8] : memref<256x128xf32, #tpu.memory_space<vmem>>, vector<256x128xf32>
      %cst_9 = arith.constant 0.000000e+00 : f32
      %16 = vector.broadcast %cst_9 : f32 to vector<256x128xf32>
      %17 = arith.cmpf oge, %15, %16 : vector<256x128xf32>
      %cst_10 = arith.constant 2.000000e-01 : f32
      %18 = vector.broadcast %cst_10 : f32 to vector<256x128xf32>
      %19 = arith.mulf %18, %15 : vector<256x128xf32>
      %20 = arith.select %17, %15, %19 : vector<256x128xi1>, vector<256x128xf32>
      %21 = arith.truncf %20 : vector<256x128xf32> to vector<256x128xbf16>
      %c0_11 = arith.constant 0 : index
      %c0_12 = arith.constant 0 : index
      %22 = vector.load %arg5[%c0_11, %c0_12] : memref<256x128xbf16, #tpu.memory_space<vmem>>, vector<256x128xbf16>
      tpu.vector_store %arg5[%c0_11, %c0_12], %21 {strides = array<i32>} : memref<256x128xbf16, #tpu.memory_space<vmem>>, vector<256x128xbf16>,
    } else {
    }
    return
  }
  func.func @transform_0(%arg0: i32, %arg1: i32) -> (i32, i32) {
    %c0_i32 = arith.constant 0 : i32
    return %arg0, %arg1 : i32, i32
  }
  func.func @transform_1(%arg0: i32, %arg1: i32) -> (i32, i32) {
    %c0_i32 = arith.constant 0 : i32
    %c0_i32_0 = arith.constant 0 : i32
    %c0_i32_1 = arith.constant 0 : i32
    return %c0_i32, %c0_i32_0 : i32, i32
  }
  func.func @transform_2(%arg0: i32, %arg1: i32) -> (i32, i32) {
    %c0_i32 = arith.constant 0 : i32
    %c0_i32_0 = arith.constant 0 : i32
    %c0_i32_1 = arith.constant 0 : i32
    return %c0_i32, %c0_i32_0 : i32, i32
  }
  func.func @transform_3(%arg0: i32, %arg1: i32) -> (i32, i32) {
    %c0_i32 = arith.constant 0 : i32
    %c0_i32_0 = arith.constant 0 : i32
    return %arg0, %c0_i32 : i32, i32
  }
}

module attributes {stable_mosaic.version = 11 : i64} {
  func.func @_conv_kernel(%arg0: i32, %arg1: i32, %arg2: memref<64x128xbf16, #tpu.memory_space<vmem>>, %arg3: memref<128x128xbf16, #tpu.memory_space<vmem>>, %arg4: memref<64x128xbf16, #tpu.memory_space<vmem>>, %arg5: memref<1x2x128xf32, #tpu.memory_space<vmem>>, %arg6: memref<64x128xf32, #tpu.memory_space<vmem>>) attributes {dimension_semantics = [#tpu.dimension_semantics<parallel>, #tpu.dimension_semantics<arbitrary>], iteration_bounds = array<i64: 2, 1>, scalar_prefetch = 0 : i64, scratch_operands = 1 : i64, tpu.core_type = #tpu.core_type<tc>, window_params = [{transform_indices = @transform_0, window_bounds = array<i64: 64, 128>}, {pipeline_mode = #tpu.pipeline_mode<synchronous>, transform_indices = @transform_1, window_bounds = array<i64: 128, 128>}, {transform_indices = @transform_2, window_bounds = array<i64: 64, 128>}, {transform_indices = @transform_3, window_bounds = array<i64: 1, 2, 128>}]} {
    %c128_i32 = arith.constant 128 : i32
    %0 = arith.muli %arg1, %c128_i32 : i32
    %1 = tpu.assume_multiple %0, 128 : i32
    %2 = arith.index_cast %1 : i32 to index
    %c0 = arith.constant 0 : index
    %3 = vector.load %arg3[%2, %c0] : memref<128x128xbf16, #tpu.memory_space<vmem>>, vector<128x128xbf16>
    %c0_0 = arith.constant 0 : index
    %c0_1 = arith.constant 0 : index
    %4 = vector.load %arg2[%c0_0, %c0_1] : memref<64x128xbf16, #tpu.memory_space<vmem>>, vector<64x128xbf16>
    %cst = arith.constant dense<0.000000e+00> : vector<64x128xf32>
    %5 = tpu.matmul %4, %3, %cst {dimension_numbers = #tpu.dot_dimension_numbers<[1], [0], [0], [1], [0, 0, 1, 1], [], []>} : vector<64x128xbf16>, vector<128x128xbf16>, vector<64x128xf32> -> vector<64x128xf32>
    %c0_i32 = arith.constant 0 : i32
    %6 = arith.cmpi eq, %arg1, %c0_i32 : i32
    %7 = arith.extui %6 : i1 to i32
    %c0_i32_2 = arith.constant 0 : i32
    %8 = arith.cmpi ne, %7, %c0_i32_2 : i32
    scf.if %8 {
      %c0_7 = arith.constant 0 : index
      %c0_8 = arith.constant 0 : index
      %15 = vector.load %arg6[%c0_7, %c0_8] : memref<64x128xf32, #tpu.memory_space<vmem>>, vector<64x128xf32>
      tpu.vector_store %arg6[%c0_7, %c0_8], %5 {strides = array<i32>} : memref<64x128xf32, #tpu.memory_space<vmem>>, vector<64x128xf32>,
    } else {
    }
    %c0_i32_3 = arith.constant 0 : i32
    %9 = arith.cmpi sgt, %arg1, %c0_i32_3 : i32
    %10 = arith.extui %9 : i1 to i32
    %c0_i32_4 = arith.constant 0 : i32
    %11 = arith.cmpi ne, %10, %c0_i32_4 : i32
    scf.if %11 {
      %c0_7 = arith.constant 0 : index
      %c0_8 = arith.constant 0 : index
      %15 = vector.load %arg6[%c0_7, %c0_8] : memref<64x128xf32, #tpu.memory_space<vmem>>, vector<64x128xf32>
      %16 = arith.addf %15, %5 : vector<64x128xf32>
      %c0_9 = arith.constant 0 : index
      %c0_10 = arith.constant 0 : index
      %17 = vector.load %arg6[%c0_9, %c0_10] : memref<64x128xf32, #tpu.memory_space<vmem>>, vector<64x128xf32>
      tpu.vector_store %arg6[%c0_9, %c0_10], %16 {strides = array<i32>} : memref<64x128xf32, #tpu.memory_space<vmem>>, vector<64x128xf32>,
    } else {
    }
    %c0_i32_5 = arith.constant 0 : i32
    %12 = arith.cmpi eq, %arg1, %c0_i32_5 : i32
    %13 = arith.extui %12 : i1 to i32
    %c0_i32_6 = arith.constant 0 : i32
    %14 = arith.cmpi ne, %13, %c0_i32_6 : i32
    scf.if %14 {
      %c0_7 = arith.constant 0 : index
      %c0_8 = arith.constant 0 : index
      %15 = vector.load %arg6[%c0_7, %c0_8] : memref<64x128xf32, #tpu.memory_space<vmem>>, vector<64x128xf32>
      %cst_9 = arith.constant dense<0.000000e+00> : vector<128xf32>
      %16 = vector.multi_reduction <add>, %15, %cst_9 [0] : vector<64x128xf32> to vector<128xf32>
      %17 = vector.shape_cast %16 : vector<128xf32> to vector<1x128xf32>
      %c0_10 = arith.constant 0 : index
      %c0_11 = arith.constant 0 : index
      %c0_12 = arith.constant 0 : index
      %18 = vector.load %arg5[%c0_10, %c0_11, %c0_12] : memref<1x2x128xf32, #tpu.memory_space<vmem>>, vector<1x1x128xf32>
      %19 = vector.shape_cast %18 : vector<1x1x128xf32> to vector<1x128xf32>
      %20 = vector.shape_cast %17 : vector<1x128xf32> to vector<1x1x128xf32>
      tpu.vector_store %arg5[%c0_10, %c0_11, %c0_12], %20 {strides = array<i32>} : memref<1x2x128xf32, #tpu.memory_space<vmem>>, vector<1x1x128xf32>,
      %21 = arith.mulf %15, %15 : vector<64x128xf32>
      %cst_13 = arith.constant dense<0.000000e+00> : vector<128xf32>
      %22 = vector.multi_reduction <add>, %21, %cst_13 [0] : vector<64x128xf32> to vector<128xf32>
      %23 = vector.shape_cast %22 : vector<128xf32> to vector<1x128xf32>
      %c0_14 = arith.constant 0 : index
      %c1 = arith.constant 1 : index
      %c0_15 = arith.constant 0 : index
      %24 = vector.load %arg5[%c0_14, %c1, %c0_15] : memref<1x2x128xf32, #tpu.memory_space<vmem>>, vector<1x1x128xf32>
      %25 = vector.shape_cast %24 : vector<1x1x128xf32> to vector<1x128xf32>
      %26 = vector.shape_cast %23 : vector<1x128xf32> to vector<1x1x128xf32>
      tpu.vector_store %arg5[%c0_14, %c1, %c0_15], %26 {strides = array<i32>} : memref<1x2x128xf32, #tpu.memory_space<vmem>>, vector<1x1x128xf32>,
      %27 = arith.truncf %15 : vector<64x128xf32> to vector<64x128xbf16>
      %c0_16 = arith.constant 0 : index
      %c0_17 = arith.constant 0 : index
      %28 = vector.load %arg4[%c0_16, %c0_17] : memref<64x128xbf16, #tpu.memory_space<vmem>>, vector<64x128xbf16>
      tpu.vector_store %arg4[%c0_16, %c0_17], %27 {strides = array<i32>} : memref<64x128xbf16, #tpu.memory_space<vmem>>, vector<64x128xbf16>,
    } else {
    }
    return
  }
  func.func @transform_0(%arg0: i32, %arg1: i32) -> (i32, i32) {
    %c0_i32 = arith.constant 0 : i32
    return %arg0, %arg1 : i32, i32
  }
  func.func @transform_1(%arg0: i32, %arg1: i32) -> (i32, i32) {
    %c0_i32 = arith.constant 0 : i32
    %c0_i32_0 = arith.constant 0 : i32
    %c0_i32_1 = arith.constant 0 : i32
    return %c0_i32, %c0_i32_0 : i32, i32
  }
  func.func @transform_2(%arg0: i32, %arg1: i32) -> (i32, i32) {
    %c0_i32 = arith.constant 0 : i32
    %c0_i32_0 = arith.constant 0 : i32
    return %arg0, %c0_i32 : i32, i32
  }
  func.func @transform_3(%arg0: i32, %arg1: i32) -> (i32, i32, i32) {
    %c0_i32 = arith.constant 0 : i32
    %c0_i32_0 = arith.constant 0 : i32
    %c0_i32_1 = arith.constant 0 : i32
    return %arg0, %c0_i32, %c0_i32_0 : i32, i32, i32
  }
}

module attributes {stable_mosaic.version = 11 : i64} {
  func.func @_conv_kernel(%arg0: i32, %arg1: i32, %arg2: memref<16x256xbf16, #tpu.memory_space<vmem>>, %arg3: memref<256x128xbf16, #tpu.memory_space<vmem>>, %arg4: memref<16x128xbf16, #tpu.memory_space<vmem>>, %arg5: memref<1x2x128xf32, #tpu.memory_space<vmem>>, %arg6: memref<16x128xf32, #tpu.memory_space<vmem>>) attributes {dimension_semantics = [#tpu.dimension_semantics<parallel>, #tpu.dimension_semantics<arbitrary>], iteration_bounds = array<i64: 2, 1>, scalar_prefetch = 0 : i64, scratch_operands = 1 : i64, tpu.core_type = #tpu.core_type<tc>, window_params = [{transform_indices = @transform_0, window_bounds = array<i64: 16, 256>}, {pipeline_mode = #tpu.pipeline_mode<synchronous>, transform_indices = @transform_1, window_bounds = array<i64: 256, 128>}, {transform_indices = @transform_2, window_bounds = array<i64: 16, 128>}, {transform_indices = @transform_3, window_bounds = array<i64: 1, 2, 128>}]} {
    %c256_i32 = arith.constant 256 : i32
    %0 = arith.muli %arg1, %c256_i32 : i32
    %1 = tpu.assume_multiple %0, 128 : i32
    %2 = arith.index_cast %1 : i32 to index
    %c0 = arith.constant 0 : index
    %3 = vector.load %arg3[%2, %c0] : memref<256x128xbf16, #tpu.memory_space<vmem>>, vector<256x128xbf16>
    %c0_0 = arith.constant 0 : index
    %c0_1 = arith.constant 0 : index
    %4 = vector.load %arg2[%c0_0, %c0_1] : memref<16x256xbf16, #tpu.memory_space<vmem>>, vector<16x256xbf16>
    %cst = arith.constant dense<0.000000e+00> : vector<16x128xf32>
    %5 = tpu.matmul %4, %3, %cst {dimension_numbers = #tpu.dot_dimension_numbers<[1], [0], [0], [1], [0, 0, 1, 1], [], []>} : vector<16x256xbf16>, vector<256x128xbf16>, vector<16x128xf32> -> vector<16x128xf32>
    %c0_i32 = arith.constant 0 : i32
    %6 = arith.cmpi eq, %arg1, %c0_i32 : i32
    %7 = arith.extui %6 : i1 to i32
    %c0_i32_2 = arith.constant 0 : i32
    %8 = arith.cmpi ne, %7, %c0_i32_2 : i32
    scf.if %8 {
      %c0_7 = arith.constant 0 : index
      %c0_8 = arith.constant 0 : index
      %15 = vector.load %arg6[%c0_7, %c0_8] : memref<16x128xf32, #tpu.memory_space<vmem>>, vector<16x128xf32>
      tpu.vector_store %arg6[%c0_7, %c0_8], %5 {strides = array<i32>} : memref<16x128xf32, #tpu.memory_space<vmem>>, vector<16x128xf32>,
    } else {
    }
    %c0_i32_3 = arith.constant 0 : i32
    %9 = arith.cmpi sgt, %arg1, %c0_i32_3 : i32
    %10 = arith.extui %9 : i1 to i32
    %c0_i32_4 = arith.constant 0 : i32
    %11 = arith.cmpi ne, %10, %c0_i32_4 : i32
    scf.if %11 {
      %c0_7 = arith.constant 0 : index
      %c0_8 = arith.constant 0 : index
      %15 = vector.load %arg6[%c0_7, %c0_8] : memref<16x128xf32, #tpu.memory_space<vmem>>, vector<16x128xf32>
      %16 = arith.addf %15, %5 : vector<16x128xf32>
      %c0_9 = arith.constant 0 : index
      %c0_10 = arith.constant 0 : index
      %17 = vector.load %arg6[%c0_9, %c0_10] : memref<16x128xf32, #tpu.memory_space<vmem>>, vector<16x128xf32>
      tpu.vector_store %arg6[%c0_9, %c0_10], %16 {strides = array<i32>} : memref<16x128xf32, #tpu.memory_space<vmem>>, vector<16x128xf32>,
    } else {
    }
    %c0_i32_5 = arith.constant 0 : i32
    %12 = arith.cmpi eq, %arg1, %c0_i32_5 : i32
    %13 = arith.extui %12 : i1 to i32
    %c0_i32_6 = arith.constant 0 : i32
    %14 = arith.cmpi ne, %13, %c0_i32_6 : i32
    scf.if %14 {
      %c0_7 = arith.constant 0 : index
      %c0_8 = arith.constant 0 : index
      %15 = vector.load %arg6[%c0_7, %c0_8] : memref<16x128xf32, #tpu.memory_space<vmem>>, vector<16x128xf32>
      %cst_9 = arith.constant dense<0.000000e+00> : vector<128xf32>
      %16 = vector.multi_reduction <add>, %15, %cst_9 [0] : vector<16x128xf32> to vector<128xf32>
      %17 = vector.shape_cast %16 : vector<128xf32> to vector<1x128xf32>
      %c0_10 = arith.constant 0 : index
      %c0_11 = arith.constant 0 : index
      %c0_12 = arith.constant 0 : index
      %18 = vector.load %arg5[%c0_10, %c0_11, %c0_12] : memref<1x2x128xf32, #tpu.memory_space<vmem>>, vector<1x1x128xf32>
      %19 = vector.shape_cast %18 : vector<1x1x128xf32> to vector<1x128xf32>
      %20 = vector.shape_cast %17 : vector<1x128xf32> to vector<1x1x128xf32>
      tpu.vector_store %arg5[%c0_10, %c0_11, %c0_12], %20 {strides = array<i32>} : memref<1x2x128xf32, #tpu.memory_space<vmem>>, vector<1x1x128xf32>,
      %21 = arith.mulf %15, %15 : vector<16x128xf32>
      %cst_13 = arith.constant dense<0.000000e+00> : vector<128xf32>
      %22 = vector.multi_reduction <add>, %21, %cst_13 [0] : vector<16x128xf32> to vector<128xf32>
      %23 = vector.shape_cast %22 : vector<128xf32> to vector<1x128xf32>
      %c0_14 = arith.constant 0 : index
      %c1 = arith.constant 1 : index
      %c0_15 = arith.constant 0 : index
      %24 = vector.load %arg5[%c0_14, %c1, %c0_15] : memref<1x2x128xf32, #tpu.memory_space<vmem>>, vector<1x1x128xf32>
      %25 = vector.shape_cast %24 : vector<1x1x128xf32> to vector<1x128xf32>
      %26 = vector.shape_cast %23 : vector<1x128xf32> to vector<1x1x128xf32>
      tpu.vector_store %arg5[%c0_14, %c1, %c0_15], %26 {strides = array<i32>} : memref<1x2x128xf32, #tpu.memory_space<vmem>>, vector<1x1x128xf32>,
      %27 = arith.truncf %15 : vector<16x128xf32> to vector<16x128xbf16>
      %c0_16 = arith.constant 0 : index
      %c0_17 = arith.constant 0 : index
      %28 = vector.load %arg4[%c0_16, %c0_17] : memref<16x128xbf16, #tpu.memory_space<vmem>>, vector<16x128xbf16>
      tpu.vector_store %arg4[%c0_16, %c0_17], %27 {strides = array<i32>} : memref<16x128xbf16, #tpu.memory_space<vmem>>, vector<16x128xbf16>,
    } else {
    }
    return
  }
  func.func @transform_0(%arg0: i32, %arg1: i32) -> (i32, i32) {
    %c0_i32 = arith.constant 0 : i32
    return %arg0, %arg1 : i32, i32
  }
  func.func @transform_1(%arg0: i32, %arg1: i32) -> (i32, i32) {
    %c0_i32 = arith.constant 0 : i32
    %c0_i32_0 = arith.constant 0 : i32
    %c0_i32_1 = arith.constant 0 : i32
    return %c0_i32, %c0_i32_0 : i32, i32
  }
  func.func @transform_2(%arg0: i32, %arg1: i32) -> (i32, i32) {
    %c0_i32 = arith.constant 0 : i32
    %c0_i32_0 = arith.constant 0 : i32
    return %arg0, %c0_i32 : i32, i32
  }
  func.func @transform_3(%arg0: i32, %arg1: i32) -> (i32, i32, i32) {
    %c0_i32 = arith.constant 0 : i32
    %c0_i32_0 = arith.constant 0 : i32
    %c0_i32_1 = arith.constant 0 : i32
    return %arg0, %c0_i32, %c0_i32_0 : i32, i32, i32
  }
}

module attributes {stable_mosaic.version = 11 : i64} {
  func.func @_conv_kernel(%arg0: i32, %arg1: i32, %arg2: memref<16x512xbf16, #tpu.memory_space<vmem>>, %arg3: memref<512x128xbf16, #tpu.memory_space<vmem>>, %arg4: memref<16x128xbf16, #tpu.memory_space<vmem>>, %arg5: memref<1x2x128xf32, #tpu.memory_space<vmem>>, %arg6: memref<16x128xf32, #tpu.memory_space<vmem>>) attributes {dimension_semantics = [#tpu.dimension_semantics<parallel>, #tpu.dimension_semantics<arbitrary>], iteration_bounds = array<i64: 2, 1>, scalar_prefetch = 0 : i64, scratch_operands = 1 : i64, tpu.core_type = #tpu.core_type<tc>, window_params = [{transform_indices = @transform_0, window_bounds = array<i64: 16, 512>}, {pipeline_mode = #tpu.pipeline_mode<synchronous>, transform_indices = @transform_1, window_bounds = array<i64: 512, 128>}, {transform_indices = @transform_2, window_bounds = array<i64: 16, 128>}, {transform_indices = @transform_3, window_bounds = array<i64: 1, 2, 128>}]} {
    %c512_i32 = arith.constant 512 : i32
    %0 = arith.muli %arg1, %c512_i32 : i32
    %1 = tpu.assume_multiple %0, 128 : i32
    %2 = arith.index_cast %1 : i32 to index
    %c0 = arith.constant 0 : index
    %3 = vector.load %arg3[%2, %c0] : memref<512x128xbf16, #tpu.memory_space<vmem>>, vector<512x128xbf16>
    %c0_0 = arith.constant 0 : index
    %c0_1 = arith.constant 0 : index
    %4 = vector.load %arg2[%c0_0, %c0_1] : memref<16x512xbf16, #tpu.memory_space<vmem>>, vector<16x512xbf16>
    %cst = arith.constant dense<0.000000e+00> : vector<16x128xf32>
    %5 = tpu.matmul %4, %3, %cst {dimension_numbers = #tpu.dot_dimension_numbers<[1], [0], [0], [1], [0, 0, 1, 1], [], []>} : vector<16x512xbf16>, vector<512x128xbf16>, vector<16x128xf32> -> vector<16x128xf32>
    %c0_i32 = arith.constant 0 : i32
    %6 = arith.cmpi eq, %arg1, %c0_i32 : i32
    %7 = arith.extui %6 : i1 to i32
    %c0_i32_2 = arith.constant 0 : i32
    %8 = arith.cmpi ne, %7, %c0_i32_2 : i32
    scf.if %8 {
      %c0_7 = arith.constant 0 : index
      %c0_8 = arith.constant 0 : index
      %15 = vector.load %arg6[%c0_7, %c0_8] : memref<16x128xf32, #tpu.memory_space<vmem>>, vector<16x128xf32>
      tpu.vector_store %arg6[%c0_7, %c0_8], %5 {strides = array<i32>} : memref<16x128xf32, #tpu.memory_space<vmem>>, vector<16x128xf32>,
    } else {
    }
    %c0_i32_3 = arith.constant 0 : i32
    %9 = arith.cmpi sgt, %arg1, %c0_i32_3 : i32
    %10 = arith.extui %9 : i1 to i32
    %c0_i32_4 = arith.constant 0 : i32
    %11 = arith.cmpi ne, %10, %c0_i32_4 : i32
    scf.if %11 {
      %c0_7 = arith.constant 0 : index
      %c0_8 = arith.constant 0 : index
      %15 = vector.load %arg6[%c0_7, %c0_8] : memref<16x128xf32, #tpu.memory_space<vmem>>, vector<16x128xf32>
      %16 = arith.addf %15, %5 : vector<16x128xf32>
      %c0_9 = arith.constant 0 : index
      %c0_10 = arith.constant 0 : index
      %17 = vector.load %arg6[%c0_9, %c0_10] : memref<16x128xf32, #tpu.memory_space<vmem>>, vector<16x128xf32>
      tpu.vector_store %arg6[%c0_9, %c0_10], %16 {strides = array<i32>} : memref<16x128xf32, #tpu.memory_space<vmem>>, vector<16x128xf32>,
    } else {
    }
    %c0_i32_5 = arith.constant 0 : i32
    %12 = arith.cmpi eq, %arg1, %c0_i32_5 : i32
    %13 = arith.extui %12 : i1 to i32
    %c0_i32_6 = arith.constant 0 : i32
    %14 = arith.cmpi ne, %13, %c0_i32_6 : i32
    scf.if %14 {
      %c0_7 = arith.constant 0 : index
      %c0_8 = arith.constant 0 : index
      %15 = vector.load %arg6[%c0_7, %c0_8] : memref<16x128xf32, #tpu.memory_space<vmem>>, vector<16x128xf32>
      %cst_9 = arith.constant dense<0.000000e+00> : vector<128xf32>
      %16 = vector.multi_reduction <add>, %15, %cst_9 [0] : vector<16x128xf32> to vector<128xf32>
      %17 = vector.shape_cast %16 : vector<128xf32> to vector<1x128xf32>
      %c0_10 = arith.constant 0 : index
      %c0_11 = arith.constant 0 : index
      %c0_12 = arith.constant 0 : index
      %18 = vector.load %arg5[%c0_10, %c0_11, %c0_12] : memref<1x2x128xf32, #tpu.memory_space<vmem>>, vector<1x1x128xf32>
      %19 = vector.shape_cast %18 : vector<1x1x128xf32> to vector<1x128xf32>
      %20 = vector.shape_cast %17 : vector<1x128xf32> to vector<1x1x128xf32>
      tpu.vector_store %arg5[%c0_10, %c0_11, %c0_12], %20 {strides = array<i32>} : memref<1x2x128xf32, #tpu.memory_space<vmem>>, vector<1x1x128xf32>,
      %21 = arith.mulf %15, %15 : vector<16x128xf32>
      %cst_13 = arith.constant dense<0.000000e+00> : vector<128xf32>
      %22 = vector.multi_reduction <add>, %21, %cst_13 [0] : vector<16x128xf32> to vector<128xf32>
      %23 = vector.shape_cast %22 : vector<128xf32> to vector<1x128xf32>
      %c0_14 = arith.constant 0 : index
      %c1 = arith.constant 1 : index
      %c0_15 = arith.constant 0 : index
      %24 = vector.load %arg5[%c0_14, %c1, %c0_15] : memref<1x2x128xf32, #tpu.memory_space<vmem>>, vector<1x1x128xf32>
      %25 = vector.shape_cast %24 : vector<1x1x128xf32> to vector<1x128xf32>
      %26 = vector.shape_cast %23 : vector<1x128xf32> to vector<1x1x128xf32>
      tpu.vector_store %arg5[%c0_14, %c1, %c0_15], %26 {strides = array<i32>} : memref<1x2x128xf32, #tpu.memory_space<vmem>>, vector<1x1x128xf32>,
      %27 = arith.truncf %15 : vector<16x128xf32> to vector<16x128xbf16>
      %c0_16 = arith.constant 0 : index
      %c0_17 = arith.constant 0 : index
      %28 = vector.load %arg4[%c0_16, %c0_17] : memref<16x128xbf16, #tpu.memory_space<vmem>>, vector<16x128xbf16>
      tpu.vector_store %arg4[%c0_16, %c0_17], %27 {strides = array<i32>} : memref<16x128xbf16, #tpu.memory_space<vmem>>, vector<16x128xbf16>,
    } else {
    }
    return
  }
  func.func @transform_0(%arg0: i32, %arg1: i32) -> (i32, i32) {
    %c0_i32 = arith.constant 0 : i32
    return %arg0, %arg1 : i32, i32
  }
  func.func @transform_1(%arg0: i32, %arg1: i32) -> (i32, i32) {
    %c0_i32 = arith.constant 0 : i32
    %c0_i32_0 = arith.constant 0 : i32
    %c0_i32_1 = arith.constant 0 : i32
    return %c0_i32, %c0_i32_0 : i32, i32
  }
  func.func @transform_2(%arg0: i32, %arg1: i32) -> (i32, i32) {
    %c0_i32 = arith.constant 0 : i32
    %c0_i32_0 = arith.constant 0 : i32
    return %arg0, %c0_i32 : i32, i32
  }
  func.func @transform_3(%arg0: i32, %arg1: i32) -> (i32, i32, i32) {
    %c0_i32 = arith.constant 0 : i32
    %c0_i32_0 = arith.constant 0 : i32
    %c0_i32_1 = arith.constant 0 : i32
    return %arg0, %c0_i32, %c0_i32_0 : i32, i32, i32
  }
}

module attributes {stable_mosaic.version = 11 : i64} {
  func.func @_conv_kernel(%arg0: i32, %arg1: i32, %arg2: memref<16x512xbf16, #tpu.memory_space<vmem>>, %arg3: memref<1024x128xbf16, #tpu.memory_space<vmem>>, %arg4: memref<1x128xf32, #tpu.memory_space<vmem>>, %arg5: memref<16x128xf32, #tpu.memory_space<vmem>>, %arg6: memref<16x128xf32, #tpu.memory_space<vmem>>) attributes {dimension_semantics = [#tpu.dimension_semantics<parallel>, #tpu.dimension_semantics<arbitrary>], iteration_bounds = array<i64: 1, 2>, scalar_prefetch = 0 : i64, scratch_operands = 1 : i64, tpu.core_type = #tpu.core_type<tc>, window_params = [{transform_indices = @transform_0, window_bounds = array<i64: 16, 512>}, {pipeline_mode = #tpu.pipeline_mode<synchronous>, transform_indices = @transform_1, window_bounds = array<i64: 1024, 128>}, {pipeline_mode = #tpu.pipeline_mode<synchronous>, transform_indices = @transform_2, window_bounds = array<i64: 1, 128>}, {transform_indices = @transform_3, window_bounds = array<i64: 16, 128>}]} {
    %c512_i32 = arith.constant 512 : i32
    %0 = arith.muli %arg1, %c512_i32 : i32
    %1 = tpu.assume_multiple %0, 128 : i32
    %2 = arith.index_cast %1 : i32 to index
    %c0 = arith.constant 0 : index
    %3 = vector.load %arg3[%2, %c0] : memref<1024x128xbf16, #tpu.memory_space<vmem>>, vector<512x128xbf16>
    %c0_0 = arith.constant 0 : index
    %c0_1 = arith.constant 0 : index
    %4 = vector.load %arg2[%c0_0, %c0_1] : memref<16x512xbf16, #tpu.memory_space<vmem>>, vector<16x512xbf16>
    %cst = arith.constant dense<0.000000e+00> : vector<16x128xf32>
    %5 = tpu.matmul %4, %3, %cst {dimension_numbers = #tpu.dot_dimension_numbers<[1], [0], [0], [1], [0, 0, 1, 1], [], []>} : vector<16x512xbf16>, vector<512x128xbf16>, vector<16x128xf32> -> vector<16x128xf32>
    %c0_i32 = arith.constant 0 : i32
    %6 = arith.cmpi eq, %arg1, %c0_i32 : i32
    %7 = arith.extui %6 : i1 to i32
    %c0_i32_2 = arith.constant 0 : i32
    %8 = arith.cmpi ne, %7, %c0_i32_2 : i32
    scf.if %8 {
      %c0_6 = arith.constant 0 : index
      %c0_7 = arith.constant 0 : index
      %15 = vector.load %arg4[%c0_6, %c0_7] : memref<1x128xf32, #tpu.memory_space<vmem>>, vector<1x128xf32>
      %16 = vector.broadcast %15 : vector<1x128xf32> to vector<16x128xf32>
      %17 = arith.addf %5, %16 : vector<16x128xf32>
      %c0_8 = arith.constant 0 : index
      %c0_9 = arith.constant 0 : index
      %18 = vector.load %arg6[%c0_8, %c0_9] : memref<16x128xf32, #tpu.memory_space<vmem>>, vector<16x128xf32>
      tpu.vector_store %arg6[%c0_8, %c0_9], %17 {strides = array<i32>} : memref<16x128xf32, #tpu.memory_space<vmem>>, vector<16x128xf32>,
    } else {
    }
    %c0_i32_3 = arith.constant 0 : i32
    %9 = arith.cmpi sgt, %arg1, %c0_i32_3 : i32
    %10 = arith.extui %9 : i1 to i32
    %c0_i32_4 = arith.constant 0 : i32
    %11 = arith.cmpi ne, %10, %c0_i32_4 : i32
    scf.if %11 {
      %c0_6 = arith.constant 0 : index
      %c0_7 = arith.constant 0 : index
      %15 = vector.load %arg6[%c0_6, %c0_7] : memref<16x128xf32, #tpu.memory_space<vmem>>, vector<16x128xf32>
      %16 = arith.addf %15, %5 : vector<16x128xf32>
      %c0_8 = arith.constant 0 : index
      %c0_9 = arith.constant 0 : index
      %17 = vector.load %arg6[%c0_8, %c0_9] : memref<16x128xf32, #tpu.memory_space<vmem>>, vector<16x128xf32>
      tpu.vector_store %arg6[%c0_8, %c0_9], %16 {strides = array<i32>} : memref<16x128xf32, #tpu.memory_space<vmem>>, vector<16x128xf32>,
    } else {
    }
    %c1_i32 = arith.constant 1 : i32
    %12 = arith.cmpi eq, %arg1, %c1_i32 : i32
    %13 = arith.extui %12 : i1 to i32
    %c0_i32_5 = arith.constant 0 : i32
    %14 = arith.cmpi ne, %13, %c0_i32_5 : i32
    scf.if %14 {
      %c0_6 = arith.constant 0 : index
      %c0_7 = arith.constant 0 : index
      %15 = vector.load %arg6[%c0_6, %c0_7] : memref<16x128xf32, #tpu.memory_space<vmem>>, vector<16x128xf32>
      %c0_8 = arith.constant 0 : index
      %c0_9 = arith.constant 0 : index
      %16 = vector.load %arg5[%c0_8, %c0_9] : memref<16x128xf32, #tpu.memory_space<vmem>>, vector<16x128xf32>
      tpu.vector_store %arg5[%c0_8, %c0_9], %15 {strides = array<i32>} : memref<16x128xf32, #tpu.memory_space<vmem>>, vector<16x128xf32>,
    } else {
    }
    return
  }
  func.func @transform_0(%arg0: i32, %arg1: i32) -> (i32, i32) {
    %c0_i32 = arith.constant 0 : i32
    return %arg0, %arg1 : i32, i32
  }
  func.func @transform_1(%arg0: i32, %arg1: i32) -> (i32, i32) {
    %c0_i32 = arith.constant 0 : i32
    %c0_i32_0 = arith.constant 0 : i32
    %c0_i32_1 = arith.constant 0 : i32
    return %c0_i32, %c0_i32_0 : i32, i32
  }
  func.func @transform_2(%arg0: i32, %arg1: i32) -> (i32, i32) {
    %c0_i32 = arith.constant 0 : i32
    %c0_i32_0 = arith.constant 0 : i32
    %c0_i32_1 = arith.constant 0 : i32
    return %c0_i32, %c0_i32_0 : i32, i32
  }
  func.func @transform_3(%arg0: i32, %arg1: i32) -> (i32, i32) {
    %c0_i32 = arith.constant 0 : i32
    %c0_i32_0 = arith.constant 0 : i32
    return %arg0, %c0_i32 : i32, i32
  }
}

</mosaic_0001>

<bundles_post_ra>
// kernel: _lambda_.5
= control target key start
LH: loop header
LB: loop body
LE: loop exit
PB: predicated region body
PF: predicated region fallthrough
CT: control target
= control target key end

     0   :  { %s1467_s12 = smov 0   ;;  %s1469_s13 = smov 0   ;;  %s1610_s0 = inlined_call_operand.vmem [shape: bf16[512,128], index: 0, kind: input, shape index: {}]   ;;  %s1611_s1 = inlined_call_operand.vmem [shape: bf16[128,128], index: 1, kind: input, shape index: {}]   ;;  %s1612_s2 = inlined_call_operand.vmem [shape: f32[1,128], index: 2, kind: input, shape index: {}]   ;;  %s1613_s3 = inlined_call_operand.vmem [shape: bf16[512,128], index: 3, kind: output, shape index: {}]  }
   0x1   :  { %s1471_s14 = smov 0  }
   0x2 LB: > { %s25_s15 = sadd.s32 1, %s1441_s13  ;;  %p1096_p0 = scmp.ge.s32.totalorder %s1445_s14, 1  ;;  %s1445_s14 = sphi %s1471_s14, %s13_s14   ;;  %s1441_s13 = sphi %s1469_s13, %s1615_s13   ;;  %s1437_s12 = sphi %s1467_s12, %s1614_s12  }
   0x3   : > { %p27_p1 = scmp.ge.s32.totalorder %s25_s15, 2  ;;  %p155_p2 = scmp.lt.s32.totalorder %s1445_s14, 3 }
   0x5   : > { %s1617_s15 = smov (%p27_p1, %s25_s15), 0  ;;  %p156_p3 = pnand %p1096_p0, %p155_p2 }
   0x6   : > { %v1399_v0 = vld [vmem:[%s1611_s1] sm:$0xff] (!%p156_p3)   ;;  %s1097_s18 = sshll.u32 (!%p156_p3), %s1437_s12, 5  ;;  %v1400_v1 = vld [vmem:[%s1611_s1 + $0x8] sm:$0xff] (!%p156_p3)   ;;  %v1401_v2 = vld [vmem:[%s1611_s1 + $0x10] sm:$0xff] (!%p156_p3)  }
   0x7   : > { %159 = sbr.rel (%p156_p3) target bundleno = 294 (0x126), region = 32  ;;  %p183_p4 = scmp.lt.s32.totalorder (!%p156_p3), %s1097_s18, 63  ;;  %1311 = vmatprep.subr.bf16.mxu0 (!%p156_p3), %v1399_v0  ;;  %1359 = vmatprep.subr.bf16.mxu1 (!%p156_p3), %v1399_v0  ;;  %v1402_v3 = vld [vmem:[%s1611_s1 + $0x18] sm:$0xff] (!%p156_p3)   ;;  %v1403_v6 = vld [vmem:[%s1611_s1 + $0x20] sm:$0xff] (!%p156_p3)   ;;  %v1404_v7 = vld [vmem:[%s1611_s1 + $0x28] sm:$0xff] (!%p156_p3)  }
   0x8   : > { %1312 = vmatpush3.bf16.msra.mxu0 (!%p156_p3), %v1399_v0  ;;  %1367 = vmatpush3.bf16.msra.mxu1 (!%p156_p3), %v1399_v0  ;;  %v1405_v8 = vld [vmem:[%s1611_s1 + $0x30] sm:$0xff] (!%p156_p3)   ;;  %v1406_v9 = vld [vmem:[%s1611_s1 + $0x38] sm:$0xff] (!%p156_p3)   ;;  %v1538_v24 = vld [vmem:[%s1612_s2] ss:$0 sm:$0xff] (!%p156_p3) }
   0x9   : > { %1313 = vmatprep.subr.bf16.mxu0 (!%p156_p3), %v1400_v1  ;;  %1360 = vmatprep.subr.bf16.mxu1 (!%p156_p3), %v1400_v1 }
   0xc   : > { %1314 = vmatpush3.bf16.msra.mxu0 (!%p156_p3), %v1400_v1  ;;  %1368 = vmatpush3.bf16.msra.mxu1 (!%p156_p3), %v1400_v1 }
   0xd   : > { %1315 = vmatprep.subr.bf16.mxu0 (!%p156_p3), %v1401_v2  ;;  %1361 = vmatprep.subr.bf16.mxu1 (!%p156_p3), %v1401_v2 }
   0xe   : > { %s1619_s18 = smov (!%p183_p4, %s1097_s18), 63 }
   0xf   : > { %s1098_s23 = sshll.u32 %s1619_s18, 2 }
  0x10   : > { %s1502_s26 = scalar_lea.vmem %s1610_s0, %s1098_s23  ;;  %1316 = vmatpush3.bf16.msra.mxu0 %v1401_v2  ;;  %1369 = vmatpush3.bf16.msra.mxu1 %v1401_v2  ;;  %s1555_s17 = scalar_lea.vmem %s1613_s3, %s1098_s23 }
  0x11   : > { %v1407_v4 = vld [vmem:[%s1502_s26] sm:$0xff]   ;;  %1317 = vmatprep.subr.bf16.mxu0 %v1402_v3  ;;  %1362 = vmatprep.subr.bf16.mxu1 %v1402_v3  ;;  %v1409_v10 = vld [vmem:[%s1502_s26 + $0x8] sm:$0xff]   ;;  %v1411_v12 = vld [vmem:[%s1502_s26 + $0x10] sm:$0xff]  }
  0x12   : > { %v1408_v5 = vld [vmem:[%s1502_s26 + $0x40] sm:$0xff]   ;;  %1327 = vmatprep.mubr.bf16.mxu0 %v1407_v4  ;;  %v1410_v11 = vld [vmem:[%s1502_s26 + $0x48] sm:$0xff]   ;;  %v1412_v13 = vld [vmem:[%s1502_s26 + $0x50] sm:$0xff]  }
  0x13   : > { %1343 = vmatprep.mubr.bf16.mxu1 %v1408_v5  ;;  %v1413_v14 = vld [vmem:[%s1502_s26 + $0x18] sm:$0xff]   ;;  %v1415_v16 = vld [vmem:[%s1502_s26 + $0x20] sm:$0xff]   ;;  %v1417_v18 = vld [vmem:[%s1502_s26 + $0x28] sm:$0xff]  }
  0x14   : > { %1318 = vmatpush3.bf16.msra.mxu0 %v1402_v3  ;;  %1370 = vmatpush3.bf16.msra.mxu1 %v1402_v3  ;;  %v1414_v15 = vld [vmem:[%s1502_s26 + $0x58] sm:$0xff]   ;;  %v1416_v17 = vld [vmem:[%s1502_s26 + $0x60] sm:$0xff]   ;;  %v1418_v19 = vld [vmem:[%s1502_s26 + $0x68] sm:$0xff]  }
  0x15   : > { %1319 = vmatprep.subr.bf16.mxu0 %v1403_v6  ;;  %1363 = vmatprep.subr.bf16.mxu1 %v1403_v6  ;;  %v1419_v20 = vld [vmem:[%s1502_s26 + $0x30] sm:$0xff]   ;;  %v1421_v22 = vld [vmem:[%s1502_s26 + $0x38] sm:$0xff]  }
  0x16   : > { %v1420_v21 = vld [vmem:[%s1502_s26 + $0x70] sm:$0xff]   ;;  %v1422_v23 = vld [vmem:[%s1502_s26 + $0x78] sm:$0xff]  }
  0x18   : > { %1320 = vmatpush3.bf16.msra.mxu0 %v1403_v6  ;;  %1371 = vmatpush3.bf16.msra.mxu1 %v1403_v6 }
  0x19   : > { %1321 = vmatprep.subr.bf16.mxu0 %v1404_v7  ;;  %1364 = vmatprep.subr.bf16.mxu1 %v1404_v7 }
  0x1c   : > { %1322 = vmatpush3.bf16.msra.mxu0 %v1404_v7  ;;  %1372 = vmatpush3.bf16.msra.mxu1 %v1404_v7 }
  0x1d   : > { %1323 = vmatprep.subr.bf16.mxu0 %v1405_v8  ;;  %1365 = vmatprep.subr.bf16.mxu1 %v1405_v8 }
  0x20   : > { %1324 = vmatpush3.bf16.msra.mxu0 %v1405_v8  ;;  %1373 = vmatpush3.bf16.msra.mxu1 %v1405_v8 }
  0x21   : > { %1325 = vmatprep.subr.bf16.mxu0 %v1406_v9  ;;  %1366 = vmatprep.subr.bf16.mxu1 %v1406_v9 }
  0x24   : > { %1326 = vmatpush3.bf16.msra.mxu0 %v1406_v9  ;;  %1374 = vmatpush3.bf16.msra.mxu1 %v1406_v9 }
  0x27   : > { %1328 = vmatmul.mubr.bf16.vlgmr.msra.gmra.mrb[0].mxu0 %v1409_v10  ;;  %1344 = vmatmul.mubr.bf16.vlgmr.msra.gmra.mrb[0].mxu1 %v1410_v11 }
  0x28   : > { %1331 = vmatprep.mubr.bf16.mxu0 %v1411_v12  ;;  %1347 = vmatprep.mubr.bf16.mxu1 %v1412_v13 }
  0x2f   : > { %1332 = vmatmul.mubr.bf16.gmra.mrb[4].mxu0 %v1413_v14  ;;  %1348 = vmatmul.mubr.bf16.gmra.mrb[4].mxu1 %v1414_v15 }
  0x30   : > { %1335 = vmatprep.mubr.bf16.mxu0 %v1415_v16  ;;  %1351 = vmatprep.mubr.bf16.mxu1 %v1416_v17 }
  0x37   : > { %1336 = vmatmul.mubr.bf16.gmra.mrb[8].mxu0 %v1417_v18  ;;  %1352 = vmatmul.mubr.bf16.gmra.mrb[8].mxu1 %v1418_v19 }
  0x38   : > { %1339 = vmatprep.mubr.bf16.mxu0 %v1419_v20  ;;  %1355 = vmatprep.mubr.bf16.mxu1 %v1420_v21 }
  0x3f   : > { %1340 = vmatmul.mubr.bf16.gmra.mrb[12].mxu0 %v1421_v22  ;;  %1356 = vmatmul.mubr.bf16.gmra.mrb[12].mxu1 %v1422_v23 }
  0xfa   : > { %v1329_v25 = vpop.f32.mrb[0].mxu0  ;;  %v1345_v26 = vpop.f32.mrb[0].mxu1 }
  0xfb   : > { %v569_v27 = vadd.f32 %v1329_v25, %v1538_v24  ;;  %v585_v28 = vadd.f32 %v1345_v26, %v1538_v24  ;;  %v429_v29 = vpop.f32.mrb[1].mxu0  ;;  %v493_v30 = vpop.f32.mrb[1].mxu1 }
  0xfc   : > { %v567_v31 = vadd.f32 %v1538_v24, %v429_v29  ;;  %v583_v32 = vadd.f32 %v1538_v24, %v493_v30  ;;  %v1330_v33 = vpop.f32.mrb[2].mxu0  ;;  %v1346_v34 = vpop.f32.mrb[2].mxu1 }
  0xfd   : > { %vm768_vm0 = vcmp.ge.f32.partialorder %v569_v27, 0.0  ;;  %v800_v35 = vmul.f32 0.2, %v569_v27  ;;  %vm784_vm1 = vcmp.ge.f32.partialorder %v585_v28, 0.0  ;;  %v816_v36 = vmul.f32 0.2, %v585_v28 }
  0xfe   : > { %vm766_vm2 = vcmp.ge.f32.partialorder %v567_v31, 0.0  ;;  %v798_v37 = vmul.f32 0.2, %v567_v31  ;;  %vm782_vm3 = vcmp.ge.f32.partialorder %v583_v32, 0.0  ;;  %v814_v38 = vmul.f32 0.2, %v583_v32 }
  0xff   : > { %v570_v39 = vadd.f32 %v1330_v33, %v1538_v24  ;;  %v586_v40 = vadd.f32 %v1346_v34, %v1538_v24  ;;  %v432_v41 = vpop.f32.mrb[3].mxu0  ;;  %v496_v42 = vpop.f32.mrb[3].mxu1  ;;  %v832_v43 = vsel %vm768_vm0, %v569_v27, %v800_v35  ;;  %v848_v44 = vsel %vm784_vm1, %v585_v28, %v816_v36 }
 0x100   : > { %v568_v45 = vadd.f32 %v1538_v24, %v432_v41  ;;  %v584_v46 = vadd.f32 %v1538_v24, %v496_v42  ;;  %v830_v51 = vsel %vm766_vm2, %v567_v31, %v798_v37  ;;  %v846_v52 = vsel %vm782_vm3, %v583_v32, %v814_v38 }
 0x101   : > { %vm769_vm4 = vcmp.ge.f32.partialorder %v570_v39, 0.0  ;;  %v801_v47 = vmul.f32 0.2, %v570_v39  ;;  %vm785_vm5 = vcmp.ge.f32.partialorder %v586_v40, 0.0  ;;  %v817_v48 = vmul.f32 0.2, %v586_v40 }
 0x102   : > { %vm767_vm6 = vcmp.ge.f32.partialorder %v568_v45, 0.0  ;;  %v799_v49 = vmul.f32 0.2, %v568_v45  ;;  %vm783_vm7 = vcmp.ge.f32.partialorder %v584_v46, 0.0  ;;  %v815_v50 = vmul.f32 0.2, %v584_v46 }
 0x103   : > { %v833_v53 = vsel %vm769_vm4, %v570_v39, %v801_v47  ;;  %v849_v54 = vsel %vm785_vm5, %v586_v40, %v817_v48  ;;  %v1333_v55 = vpop.f32.mrb[4].mxu0  ;;  %v1349_v56 = vpop.f32.mrb[4].mxu1 }
 0x104   : > { %v1200_v57 = vpack.c.bf16 %v833_v53, %v832_v43  ;;  %v1240_v58 = vpack.c.bf16 %v849_v54, %v848_v44  ;;  %v831_v59 = vsel %vm767_vm6, %v568_v45, %v799_v49  ;;  %v847_v60 = vsel %vm783_vm7, %v584_v46, %v815_v50  ;;  %v445_v61 = vpop.f32.mrb[5].mxu0  ;;  %v509_v62 = vpop.f32.mrb[5].mxu1 }
 0x105   : > { %v1195_v63 = vpack.c.bf16 %v831_v59, %v830_v51  ;;  %v1235_v0 = vpack.c.bf16 %v847_v60, %v846_v52  ;;  %v573_v1 = vadd.f32 %v1333_v55, %v1538_v24  ;;  %v589_v2 = vadd.f32 %v1349_v56, %v1538_v24  ;;  %v1334_v3 = vpop.f32.mrb[6].mxu0  ;;  %v1350_v4 = vpop.f32.mrb[6].mxu1 }
 0x106   : > { %1272 = vst [vmem:[%s1555_s17 + $0x8] sm:$0xff] %v1200_v57   ;;  %1280 = vst [vmem:[%s1555_s17 + $0x48] sm:$0xff] %v1240_v58   ;;  %v571_v5 = vadd.f32 %v1538_v24, %v445_v61  ;;  %v587_v6 = vadd.f32 %v1538_v24, %v509_v62  ;;  %v574_v7 = vadd.f32 %v1334_v3, %v1538_v24  ;;  %v448_v9 = vpop.f32.mrb[7].mxu0  ;;  %v512_v10 = vpop.f32.mrb[7].mxu1 }
 0x107   : > { %v590_v8 = vadd.f32 %v1350_v4, %v1538_v24  ;;  %1196 = vst [vmem:[%s1555_s17] sm:$0xff] %v1195_v63   ;;  %1279 = vst [vmem:[%s1555_s17 + $0x40] sm:$0xff] %v1235_v0   ;;  %vm772_vm8 = vcmp.ge.f32.partialorder %v573_v1, 0.0  ;;  %v804_v11 = vmul.f32 0.2, %v573_v1  ;;  %vm788_vm9 = vcmp.ge.f32.partialorder %v589_v2, 0.0 }
 0x108   : > { %v820_v12 = vmul.f32 0.2, %v589_v2  ;;  %vm770_vm10 = vcmp.ge.f32.partialorder %v571_v5, 0.0  ;;  %v802_v13 = vmul.f32 0.2, %v571_v5  ;;  %vm786_vm11 = vcmp.ge.f32.partialorder %v587_v6, 0.0 }
 0x109   : > { %v836_v14 = vsel %vm772_vm8, %v573_v1, %v804_v11  ;;  %v818_v15 = vmul.f32 0.2, %v587_v6  ;;  %vm773_vm12 = vcmp.ge.f32.partialorder %v574_v7, 0.0  ;;  %v805_v16 = vmul.f32 0.2, %v574_v7 }
 0x10a   : > { %v852_v17 = vsel %vm788_vm9, %v589_v2, %v820_v12  ;;  %v834_v18 = vsel %vm770_vm10, %v571_v5, %v802_v13  ;;  %vm789_vm13 = vcmp.ge.f32.partialorder %v590_v8, 0.0  ;;  %v821_v19 = vmul.f32 0.2, %v590_v8  ;;  %v1337_v20 = vpop.f32.mrb[8].mxu0  ;;  %v1353_v21 = vpop.f32.mrb[8].mxu1 }
 0x10b   : > { %v837_v22 = vsel %vm773_vm12, %v574_v7, %v805_v16  ;;  %v572_v23 = vadd.f32 %v1538_v24, %v448_v9  ;;  %v588_v25 = vadd.f32 %v1538_v24, %v512_v10  ;;  %v577_v26 = vadd.f32 %v1337_v20, %v1538_v24  ;;  %v461_v27 = vpop.f32.mrb[9].mxu0  ;;  %v525_v28 = vpop.f32.mrb[9].mxu1 }
 0x10c   : > { %v1210_v29 = vpack.c.bf16 %v837_v22, %v836_v14  ;;  %v853_v30 = vsel %vm789_vm13, %v590_v8, %v821_v19  ;;  %v593_v31 = vadd.f32 %v1353_v21, %v1538_v24  ;;  %v575_v32 = vadd.f32 %v1538_v24, %v461_v27  ;;  %v1338_v33 = vpop.f32.mrb[10].mxu0  ;;  %v1354_v34 = vpop.f32.mrb[10].mxu1 }
 0x10d   : > { %v1250_v35 = vpack.c.bf16 %v853_v30, %v852_v17  ;;  %vm771_vm14 = vcmp.ge.f32.partialorder %v572_v23, 0.0  ;;  %v803_v36 = vmul.f32 0.2, %v572_v23  ;;  %vm787_vm15 = vcmp.ge.f32.partialorder %v588_v25, 0.0  ;;  %v464_v37 = vpop.f32.mrb[11].mxu0  ;;  %v528_v38 = vpop.f32.mrb[11].mxu1 }
 0x10e   : > { %1274 = vst [vmem:[%s1555_s17 + $0x18] sm:$0xff] %v1210_v29   ;;  %v819_v39 = vmul.f32 0.2, %v588_v25  ;;  %vm776_vm0 = vcmp.ge.f32.partialorder %v577_v26, 0.0  ;;  %v808_v40 = vmul.f32 0.2, %v577_v26  ;;  %v850_v41 = vsel %vm786_vm11, %v587_v6, %v818_v15 }
 0x10f   : > { %vm792_vm1 = vcmp.ge.f32.partialorder %v593_v31, 0.0  ;;  %1282 = vst [vmem:[%s1555_s17 + $0x58] sm:$0xff] %v1250_v35   ;;  %v835_v42 = vsel %vm771_vm14, %v572_v23, %v803_v36  ;;  %v824_v43 = vmul.f32 0.2, %v593_v31  ;;  %vm774_vm2 = vcmp.ge.f32.partialorder %v575_v32, 0.0 }
 0x110   : > { %v1205_v44 = vpack.c.bf16 %v835_v42, %v834_v18  ;;  %v851_v45 = vsel %vm787_vm15, %v588_v25, %v819_v39  ;;  %v806_v46 = vmul.f32 0.2, %v575_v32  ;;  %v591_v47 = vadd.f32 %v1538_v24, %v525_v28 }
 0x111   : > { %v1245_v48 = vpack.c.bf16 %v851_v45, %v850_v41  ;;  %v840_v49 = vsel %vm776_vm0, %v577_v26, %v808_v40  ;;  %v856_v50 = vsel %vm792_vm1, %v593_v31, %v824_v43  ;;  %v578_v51 = vadd.f32 %v1338_v33, %v1538_v24 }
 0x112   : > { %1273 = vst [vmem:[%s1555_s17 + $0x10] sm:$0xff] %v1205_v44   ;;  %vm790_vm3 = vcmp.ge.f32.partialorder %v591_v47, 0.0  ;;  %v822_v52 = vmul.f32 0.2, %v591_v47  ;;  %v594_v53 = vadd.f32 %v1354_v34, %v1538_v24  ;;  %v576_v54 = vadd.f32 %v1538_v24, %v464_v37  ;;  %v1341_v55 = vpop.f32.mrb[12].mxu0  ;;  %v1357_v56 = vpop.f32.mrb[12].mxu1 }
 0x113   : > { %1281 = vst [vmem:[%s1555_s17 + $0x50] sm:$0xff] %v1245_v48   ;;  %vm777_vm4 = vcmp.ge.f32.partialorder %v578_v51, 0.0  ;;  %v809_v57 = vmul.f32 0.2, %v578_v51  ;;  %v592_v58 = vadd.f32 %v1538_v24, %v528_v38  ;;  %v581_v59 = vadd.f32 %v1341_v55, %v1538_v24  ;;  %v477_v60 = vpop.f32.mrb[13].mxu0  ;;  %v541_v61 = vpop.f32.mrb[13].mxu1 }
 0x114   : > { %v838_v62 = vsel %vm774_vm2, %v575_v32, %v806_v46  ;;  %vm793_vm5 = vcmp.ge.f32.partialorder %v594_v53, 0.0  ;;  %v825_v63 = vmul.f32 0.2, %v594_v53  ;;  %vm775_vm6 = vcmp.ge.f32.partialorder %v576_v54, 0.0  ;;  %v1342_v0 = vpop.f32.mrb[14].mxu0  ;;  %v1358_v1 = vpop.f32.mrb[14].mxu1 }
 0x115   : > { %v841_v2 = vsel %vm777_vm4, %v578_v51, %v809_v57  ;;  %v807_v3 = vmul.f32 0.2, %v576_v54  ;;  %vm791_vm7 = vcmp.ge.f32.partialorder %v592_v58, 0.0  ;;  %v823_v4 = vmul.f32 0.2, %v592_v58  ;;  %v480_v5 = vpop.f32.mrb[15].mxu0 }
 0x116   : > { %v854_v6 = vsel %vm790_vm3, %v591_v47, %v822_v52  ;;  %v1220_v7 = vpack.c.bf16 %v841_v2, %v840_v49  ;;  %v857_v8 = vsel %vm793_vm5, %v594_v53, %v825_v63  ;;  %v812_v9 = vmul.f32 0.2, %v581_v59  ;;  %v544_v10 = vpop.f32.mrb[15].mxu1 }
 0x117   : > { %v1260_v11 = vpack.c.bf16 %v857_v8, %v856_v50  ;;  %v839_v12 = vsel %vm775_vm6, %v576_v54, %v807_v3  ;;  %v855_v13 = vsel %vm791_vm7, %v592_v58, %v823_v4  ;;  %v597_v14 = vadd.f32 %v1357_v56, %v1538_v24 }
 0x118   : > { %1276 = vst [vmem:[%s1555_s17 + $0x28] sm:$0xff] %v1220_v7   ;;  %v1215_v15 = vpack.c.bf16 %v839_v12, %v838_v62  ;;  %v1255_v16 = vpack.c.bf16 %v855_v13, %v854_v6  ;;  %vm780_vm8 = vcmp.ge.f32.partialorder %v581_v59, 0.0  ;;  %v579_v17 = vadd.f32 %v1538_v24, %v477_v60 }
 0x119   : > { %1284 = vst [vmem:[%s1555_s17 + $0x68] sm:$0xff] %v1260_v11   ;;  %vm796_vm9 = vcmp.ge.f32.partialorder %v597_v14, 0.0  ;;  %v828_v18 = vmul.f32 0.2, %v597_v14  ;;  %v595_v19 = vadd.f32 %v1538_v24, %v541_v61  ;;  %v582_v20 = vadd.f32 %v1342_v0, %v1538_v24 }
 0x11a   : > { %1275 = vst [vmem:[%s1555_s17 + $0x20] sm:$0xff] %v1215_v15   ;;  %1283 = vst [vmem:[%s1555_s17 + $0x60] sm:$0xff] %v1255_v16   ;;  %v810_v21 = vmul.f32 0.2, %v579_v17  ;;  %v598_v22 = vadd.f32 %v1358_v1, %v1538_v24  ;;  %v580_v23 = vadd.f32 %v1538_v24, %v480_v5  ;;  %v844_v25 = vsel %vm780_vm8, %v581_v59, %v812_v9 }
 0x11b   : > { %vm778_vm10 = vcmp.ge.f32.partialorder %v579_v17, 0.0  ;;  %vm781_vm11 = vcmp.ge.f32.partialorder %v582_v20, 0.0  ;;  %v860_v26 = vsel %vm796_vm9, %v597_v14, %v828_v18  ;;  %v813_v27 = vmul.f32 0.2, %v582_v20 }
 0x11c   : > { %vm797_vm12 = vcmp.ge.f32.partialorder %v598_v22, 0.0  ;;  %v829_v28 = vmul.f32 0.2, %v598_v22  ;;  %vm794_vm13 = vcmp.ge.f32.partialorder %v595_v19, 0.0  ;;  %vm779_vm14 = vcmp.ge.f32.partialorder %v580_v23, 0.0 }
 0x11d   : > { %v811_v29 = vmul.f32 0.2, %v580_v23  ;;  %v596_v30 = vadd.f32 %v1538_v24, %v544_v10  ;;  %v842_v31 = vsel %vm778_vm10, %v579_v17, %v810_v21  ;;  %v826_v32 = vmul.f32 0.2, %v595_v19 }
 0x11e   : > { %v845_v33 = vsel %vm781_vm11, %v582_v20, %v813_v27  ;;  %v861_v34 = vsel %vm797_vm12, %v598_v22, %v829_v28 }
 0x11f   : > { %v1230_v35 = vpack.c.bf16 %v845_v33, %v844_v25  ;;  %v1270_v36 = vpack.c.bf16 %v861_v34, %v860_v26  ;;  %v843_v37 = vsel %vm779_vm14, %v580_v23, %v811_v29  ;;  %vm795_vm15 = vcmp.ge.f32.partialorder %v596_v30, 0.0 }
 0x120   : > { %v1225_v38 = vpack.c.bf16 %v843_v37, %v842_v31  ;;  %v827_v39 = vmul.f32 0.2, %v596_v30  ;;  %v858_v40 = vsel %vm794_vm13, %v595_v19, %v826_v32 }
 0x121   : > { %1278 = vst [vmem:[%s1555_s17 + $0x38] sm:$0xff] %v1230_v35   ;;  %1286 = vst [vmem:[%s1555_s17 + $0x78] sm:$0xff] %v1270_v36  }
 0x122   : > { %1277 = vst [vmem:[%s1555_s17 + $0x30] sm:$0xff] %v1225_v38   ;;  %v859_v41 = vsel %vm795_vm15, %v596_v30, %v827_v39 }
 0x123   : > { %v1265_v42 = vpack.c.bf16 %v859_v41, %v858_v40 }
 0x125   : > { %1285 = vst [vmem:[%s1555_s17 + $0x70] sm:$0xff] %v1265_v42  }
 0x126 PF: > { %s13_s14 = sadd.s32 1, %s1445_s14   ;;  %s1614_s12 = smov %s1441_s13 }
 0x127   : > { %p10_p5 = scmp.ge.s32.totalorder %s13_s14, 4   ;;  %s1615_s13 = smov %s1617_s15 }
 0x129   :  { %12 = sbr.rel (!%p10_p5) target bundleno = 2 (0x2), region = 75 }

// kernel: _lambda_.6
= control target key start
LH: loop header
LB: loop body
LE: loop exit
PB: predicated region body
PF: predicated region fallthrough
CT: control target
= control target key end

     0   :  { %s798_s12 = smov 0   ;;  %s800_s13 = smov 0   ;;  %s876_s0 = inlined_call_operand.vmem [shape: bf16[128,128], index: 0, kind: input, shape index: {}]   ;;  %s877_s1 = inlined_call_operand.vmem [shape: bf16[128,128], index: 1, kind: input, shape index: {}]   ;;  %s878_s2 = inlined_call_operand.vmem [shape: bf16[128,128], index: 2, kind: output, shape index: {0}]   ;;  %s879_s3 = inlined_call_operand.vmem [shape: f32[2,2,128], index: 3, kind: output, shape index: {1}]  }
   0x1   :  { %s802_s14 = smov 0  }
   0x2 LB: > { %s26_s15 = sadd.s32 1, %s772_s13  ;;  %p607_p0 = scmp.ge.s32.totalorder %s776_s14, 1  ;;  %s776_s14 = sphi %s802_s14, %s14_s14   ;;  %s772_s13 = sphi %s800_s13, %s881_s13   ;;  %s768_s12 = sphi %s798_s12, %s880_s12  }
   0x3   : > { %p28_p1 = scmp.ge.s32.totalorder %s26_s15, 2  ;;  %p158_p2 = scmp.lt.s32.totalorder %s776_s14, 3 }
   0x5   : > { %s883_s15 = smov (%p28_p1, %s26_s15), 0  ;;  %p159_p3 = pnand %p607_p0, %p158_p2 }
   0x6   : > { %v742_v0 = vld [vmem:[%s877_s1] sm:$0xff] (!%p159_p3)   ;;  %s608_s18 = sshll.u32 (!%p159_p3), %s768_s12, 3  ;;  %v743_v1 = vld [vmem:[%s877_s1 + $0x8] sm:$0xff] (!%p159_p3)   ;;  %v744_v2 = vld [vmem:[%s877_s1 + $0x10] sm:$0xff] (!%p159_p3)   ;;  %p204_p5 = scmp.lt.s32.totalorder (!%p159_p3), %s768_s12, 1 }
   0x7   : > { %162 = sbr.rel (%p159_p3) target bundleno = 283 (0x11b), region = 28  ;;  %p190_p4 = scmp.lt.s32.totalorder (!%p159_p3), %s608_s18, 15  ;;  %678 = vmatprep.subr.bf16.mxu0 (!%p159_p3), %v742_v0  ;;  %702 = vmatprep.subr.bf16.mxu1 (!%p159_p3), %v742_v0  ;;  %v745_v3 = vld [vmem:[%s877_s1 + $0x18] sm:$0xff] (!%p159_p3)   ;;  %v746_v6 = vld [vmem:[%s877_s1 + $0x20] sm:$0xff] (!%p159_p3)   ;;  %v747_v7 = vld [vmem:[%s877_s1 + $0x28] sm:$0xff] (!%p159_p3)  }
   0x8   : > { %679 = vmatpush3.bf16.msra.mxu0 (!%p159_p3), %v742_v0  ;;  %710 = vmatpush3.bf16.msra.mxu1 (!%p159_p3), %v742_v0  ;;  %v748_v8 = vld [vmem:[%s877_s1 + $0x30] sm:$0xff] (!%p159_p3)   ;;  %v749_v9 = vld [vmem:[%s877_s1 + $0x38] sm:$0xff] (!%p159_p3)  }
   0x9   : > { %680 = vmatprep.subr.bf16.mxu0 (!%p159_p3), %v743_v1  ;;  %703 = vmatprep.subr.bf16.mxu1 (!%p159_p3), %v743_v1 }
   0xc   : > { %681 = vmatpush3.bf16.msra.mxu0 (!%p159_p3), %v743_v1  ;;  %711 = vmatpush3.bf16.msra.mxu1 (!%p159_p3), %v743_v1 }
   0xd   : > { %682 = vmatprep.subr.bf16.mxu0 (!%p159_p3), %v744_v2  ;;  %704 = vmatprep.subr.bf16.mxu1 (!%p159_p3), %v744_v2 }
   0xe   : > { %s885_s18 = smov (!%p190_p4, %s608_s18), 15  ;;  %s887_s12 = smov (!%p204_p5, %s768_s12), 1 }
   0xf   : > { %s609_s23 = sshll.u32 %s885_s18, 2  ;;  %s612_s17 = sshll.u32 %s887_s12, 1 }
  0x10   : > { %s836_s26 = scalar_lea.vmem %s876_s0, %s609_s23  ;;  %683 = vmatpush3.bf16.msra.mxu0 %v744_v2  ;;  %712 = vmatpush3.bf16.msra.mxu1 %v744_v2  ;;  %s202_s16 = scalar_lea.vmem %s878_s2, %s609_s23 }
  0x11   : > { %v750_v4 = vld [vmem:[%s836_s26] sm:$0xff]   ;;  %v752_v5 = vld [vmem:[%s836_s26 + $0x10] sm:$0xff]   ;;  %684 = vmatprep.subr.bf16.mxu0 %v745_v3  ;;  %705 = vmatprep.subr.bf16.mxu1 %v745_v3  ;;  %v751_v10 = vld [vmem:[%s836_s26 + $0x8] sm:$0xff]   ;;  %s207_s20 = scalar_lea.vmem %s879_s3, %s612_s17 }
  0x12   : > { %694 = vmatprep.mubr.bf16.mxu0 %v750_v4  ;;  %698 = vmatprep.mubr.bf16.mxu1 %v752_v5  ;;  %v753_v11 = vld [vmem:[%s836_s26 + $0x18] sm:$0xff]  }
  0x14   : > { %685 = vmatpush3.bf16.msra.mxu0 %v745_v3  ;;  %713 = vmatpush3.bf16.msra.mxu1 %v745_v3 }
  0x15   : > { %686 = vmatprep.subr.bf16.mxu0 %v746_v6  ;;  %706 = vmatprep.subr.bf16.mxu1 %v746_v6 }
  0x18   : > { %687 = vmatpush3.bf16.msra.mxu0 %v746_v6  ;;  %714 = vmatpush3.bf16.msra.mxu1 %v746_v6 }
  0x19   : > { %688 = vmatprep.subr.bf16.mxu0 %v747_v7  ;;  %707 = vmatprep.subr.bf16.mxu1 %v747_v7 }
  0x1c   : > { %689 = vmatpush3.bf16.msra.mxu0 %v747_v7  ;;  %715 = vmatpush3.bf16.msra.mxu1 %v747_v7 }
  0x1d   : > { %690 = vmatprep.subr.bf16.mxu0 %v748_v8  ;;  %708 = vmatprep.subr.bf16.mxu1 %v748_v8 }
  0x20   : > { %691 = vmatpush3.bf16.msra.mxu0 %v748_v8  ;;  %716 = vmatpush3.bf16.msra.mxu1 %v748_v8 }
  0x21   : > { %692 = vmatprep.subr.bf16.mxu0 %v749_v9  ;;  %709 = vmatprep.subr.bf16.mxu1 %v749_v9 }
  0x24   : > { %693 = vmatpush3.bf16.msra.mxu0 %v749_v9  ;;  %717 = vmatpush3.bf16.msra.mxu1 %v749_v9 }
  0x27   : > { %695 = vmatmul.mubr.bf16.vlgmr.msra.gmra.mrb[0].mxu0 %v751_v10  ;;  %699 = vmatmul.mubr.bf16.vlgmr.msra.gmra.mrb[0].mxu1 %v753_v11 }
  0xfa   : > { %v696_v12 = vpop.f32.mrb[0].mxu0  ;;  %v700_v13 = vpop.f32.mrb[0].mxu1 }
  0xfb   : > { %v344_v14 = vpop.f32.mrb[1].mxu0  ;;  %v360_v15 = vpop.f32.mrb[1].mxu1  ;;  %v442_v27 = vmul.f32 %v696_v12, %v696_v12  ;;  %v446_v39 = vmul.f32 %v700_v13, %v700_v13 }
  0xfc   : > { %v697_v16 = vpop.f32.mrb[2].mxu0  ;;  %v701_v17 = vpop.f32.mrb[2].mxu1  ;;  %v440_v22 = vmul.f32 %v344_v14, %v344_v14  ;;  %v444_v33 = vmul.f32 %v360_v15, %v360_v15 }
  0xfd   : > { %v651_v18 = vpack.c.bf16 %v697_v16, %v696_v12  ;;  %v347_v19 = vpop.f32.mrb[3].mxu0  ;;  %v661_v20 = vpack.c.bf16 %v701_v17, %v700_v13  ;;  %v363_v21 = vpop.f32.mrb[3].mxu1  ;;  %v443_v30 = vmul.f32 %v697_v16, %v697_v16  ;;  %v447_v42 = vmul.f32 %v701_v17, %v701_v17 }
  0xfe   : > { %v426_v23 = vadd.f32 %v347_v19, %v344_v14  ;;  %v441_v24 = vmul.f32 %v347_v19, %v347_v19  ;;  %v646_v25 = vpack.c.bf16 %v347_v19, %v344_v14  ;;  %v656_v26 = vpack.c.bf16 %v363_v21, %v360_v15 }
  0xff   : > { %663 = vst [vmem:[%s202_s16 + $0x8] sm:$0xff] %v651_v18   ;;  %665 = vst [vmem:[%s202_s16 + $0x18] sm:$0xff] %v661_v20   ;;  %v445_v38 = vmul.f32 %v363_v21, %v363_v21 }
 0x100   : > { %v427_v28 = vadd.f32 %v696_v12, %v426_v23  ;;  %v448_v29 = vadd.f32 %v441_v24, %v440_v22  ;;  %647 = vst [vmem:[%s202_s16] sm:$0xff] %v646_v25   ;;  %664 = vst [vmem:[%s202_s16 + $0x10] sm:$0xff] %v656_v26  }
 0x102   : > { %v449_v31 = vadd.f32 %v448_v29, %v442_v27  ;;  %v428_v32 = vadd.f32 %v697_v16, %v427_v28 }
 0x104   : > { %v429_v34 = vadd.f32 %v428_v32, %v360_v15  ;;  %v450_v35 = vadd.f32 %v449_v31, %v443_v30 }
 0x106   : > { %v451_v36 = vadd.f32 %v450_v35, %v444_v33  ;;  %v430_v37 = vadd.f32 %v429_v34, %v363_v21 }
 0x108   : > { %v431_v40 = vadd.f32 %v700_v13, %v430_v37  ;;  %v452_v41 = vadd.f32 %v451_v36, %v445_v38 }
 0x10a   : > { %v432_v43 = vadd.f32 %v701_v17, %v431_v40  ;;  %v453_v44 = vadd.f32 %v452_v41, %v446_v39 }
 0x10c   : > { %v433_v45 = vrot.slane %v432_v43, 4  ;;  %v454_v46 = vadd.f32 %v453_v44, %v447_v42 }
 0x10e   : > { %v434_v47 = vadd.f32 %v433_v45, %v432_v43  ;;  %v455_v48 = vrot.slane %v454_v46, 4 }
 0x110   : > { %v435_v49 = vrot.slane %v434_v47, 2  ;;  %v456_v50 = vadd.f32 %v455_v48, %v454_v46 }
 0x112   : > { %v436_v51 = vadd.f32 %v435_v49, %v434_v47  ;;  %v457_v52 = vrot.slane %v456_v50, 2 }
 0x114   : > { %v437_v53 = vrot.slane %v436_v51, 1  ;;  %v458_v54 = vadd.f32 %v457_v52, %v456_v50 }
 0x116   : > { %v438_v55 = vadd.f32 %v437_v53, %v436_v51  ;;  %v459_v56 = vrot.slane %v458_v54, 1 }
 0x118   : > { %439 = vst [vmem:[%s207_s20] sm:$0x1] %v438_v55  ;;  %v460_v57 = vadd.f32 %v459_v56, %v458_v54 }
 0x11a   : > { %461 = vst [vmem:[%s207_s20 + $0x1] sm:$0x1] %v460_v57 }
 0x11b PF: > { %s14_s14 = sadd.s32 1, %s776_s14   ;;  %s880_s12 = smov %s772_s13 }
 0x11c   : > { %p11_p6 = scmp.ge.s32.totalorder %s14_s14, 4   ;;  %s881_s13 = smov %s883_s15 }
 0x11e   :  { %13 = sbr.rel (!%p11_p6) target bundleno = 2 (0x2), region = 83 }

// kernel: _lambda_.7
= control target key start
LH: loop header
LB: loop body
LE: loop exit
PB: predicated region body
PF: predicated region fallthrough
CT: control target
= control target key end

     0   :  { %s706_s12 = smov 0   ;;  %s708_s13 = smov 0   ;;  %s799_s0 = inlined_call_operand.vmem [shape: bf16[32,256], index: 0, kind: input, shape index: {}]   ;;  %s800_s1 = inlined_call_operand.vmem [shape: bf16[256,128], index: 1, kind: input, shape index: {}]   ;;  %s801_s2 = inlined_call_operand.vmem [shape: bf16[32,128], index: 2, kind: output, shape index: {0}]   ;;  %s802_s3 = inlined_call_operand.vmem [shape: f32[2,2,128], index: 3, kind: output, shape index: {1}]  }
   0x1   :  { %s710_s14 = smov 0  }
   0x2 LB: > { %s26_s15 = sadd.s32 1, %s680_s13  ;;  %p560_p0 = scmp.ge.s32.totalorder %s684_s14, 1  ;;  %s684_s14 = sphi %s710_s14, %s14_s14   ;;  %s680_s13 = sphi %s708_s13, %s804_s13   ;;  %s676_s12 = sphi %s706_s12, %s803_s12  }
   0x3   : > { %p28_p1 = scmp.ge.s32.totalorder %s26_s15, 2  ;;  %p161_p2 = scmp.lt.s32.totalorder %s684_s14, 3 }
   0x5   : > { %s806_s15 = smov (%p28_p1, %s26_s15), 0  ;;  %p162_p3 = pnand %p560_p0, %p161_p2 }
   0x6   : > { %v643_v0 = vld [vmem:[%s800_s1 + $0x40] sm:$0xff] (!%p162_p3)   ;;  %s561_s18 = sshll.u32 (!%p162_p3), %s676_s12, 1  ;;  %v645_v2 = vld [vmem:[%s800_s1 + $0x48] sm:$0xff] (!%p162_p3)   ;;  %v647_v4 = vld [vmem:[%s800_s1 + $0x50] sm:$0xff] (!%p162_p3)   ;;  %p212_p5 = scmp.lt.s32.totalorder (!%p162_p3), %s676_s12, 1 }
   0x7   : > { %165 = sbr.rel (%p162_p3) target bundleno = 273 (0x111), region = 28  ;;  %v644_v1 = vld [vmem:[%s800_s1] sm:$0xff] (!%p162_p3)   ;;  %597 = vmatprep.subr.bf16.mxu0 (!%p162_p3), %v643_v0  ;;  %v646_v3 = vld [vmem:[%s800_s1 + $0x8] sm:$0xff] (!%p162_p3)   ;;  %p196_p4 = scmp.lt.s32.totalorder (!%p162_p3), %s561_s18, 3  ;;  %v648_v5 = vld [vmem:[%s800_s1 + $0x10] sm:$0xff] (!%p162_p3)  }
   0x8   : > { %598 = vmatpush3.bf16.msra.mxu0 (!%p162_p3), %v644_v1  ;;  %v649_v6 = vld [vmem:[%s800_s1 + $0x58] sm:$0xff] (!%p162_p3)   ;;  %v651_v8 = vld [vmem:[%s800_s1 + $0x60] sm:$0xff] (!%p162_p3)   ;;  %v653_v10 = vld [vmem:[%s800_s1 + $0x68] sm:$0xff] (!%p162_p3)  }
   0x9   : > { %599 = vmatprep.subr.bf16.mxu0 (!%p162_p3), %v645_v2  ;;  %v650_v7 = vld [vmem:[%s800_s1 + $0x18] sm:$0xff] (!%p162_p3)   ;;  %v652_v9 = vld [vmem:[%s800_s1 + $0x20] sm:$0xff] (!%p162_p3)   ;;  %v654_v12 = vld [vmem:[%s800_s1 + $0x28] sm:$0xff] (!%p162_p3)  }
   0xa   : > { %v655_v13 = vld [vmem:[%s800_s1 + $0x70] sm:$0xff] (!%p162_p3)   ;;  %v657_v15 = vld [vmem:[%s800_s1 + $0x78] sm:$0xff] (!%p162_p3)  }
   0xb   : > { %v656_v14 = vld [vmem:[%s800_s1 + $0x30] sm:$0xff] (!%p162_p3)   ;;  %v658_v16 = vld [vmem:[%s800_s1 + $0x38] sm:$0xff] (!%p162_p3)  }
   0xc   : > { %600 = vmatpush3.bf16.msra.mxu0 (!%p162_p3), %v646_v3 }
   0xd   : > { %601 = vmatprep.subr.bf16.mxu0 (!%p162_p3), %v647_v4 }
   0xe   : > { %s808_s18 = smov (!%p196_p4, %s561_s18), 3  ;;  %s810_s12 = smov (!%p212_p5, %s676_s12), 1 }
   0xf   : > { %s589_s6 = sshll.u32 %s808_s18, 3  ;;  %s565_s4 = sshll.u32 %s808_s18, 2 }
  0x10   : > { %602 = vmatpush3.bf16.msra.mxu0 %v648_v5  ;;  %s203_s11 = scalar_lea.vmem %s799_s0, %s589_s6  ;;  %s210_s7 = scalar_lea.vmem %s801_s2, %s565_s4 }
  0x11   : > { %603 = vmatprep.subr.bf16.mxu0 %v649_v6  ;;  %v661_v11 = vld [vmem:[%s203_s11 + $0x4] ss:$8 sps:$4 sm:$0xff]   ;;  %v659_v17 = vld [vmem:[%s203_s11] ss:$8 sps:$4 sm:$0xff]   ;;  %s566_s18 = sshll.u32 %s810_s12, 1 }
  0x12   : > { %394 = vmatprep.mubr.bf16.mxu0 %v661_v11  ;;  %s215_s10 = scalar_lea.vmem %s802_s3, %s566_s18 }
  0x14   : > { %604 = vmatpush3.bf16.msra.mxu0 %v650_v7 }
  0x15   : > { %605 = vmatprep.subr.bf16.mxu0 %v651_v8 }
  0x18   : > { %606 = vmatpush3.bf16.msra.mxu0 %v652_v9 }
  0x19   : > { %607 = vmatprep.subr.bf16.mxu0 %v653_v10 }
  0x1c   : > { %608 = vmatpush3.bf16.msra.mxu0 %v654_v12 }
  0x1d   : > { %609 = vmatprep.subr.bf16.mxu0 %v655_v13 }
  0x20   : > { %610 = vmatpush3.bf16.msra.mxu0 %v656_v14 }
  0x21   : > { %611 = vmatprep.subr.bf16.mxu0 %v657_v15 }
  0x24   : > { %612 = vmatpush3.bf16.msra.mxu0 %v658_v16 }
  0x27   : > { %395 = vmatmul.mubr.bf16.vlgmr.msra.gmra.mrb[0].mxu0 %v659_v17 }
  0xfa   : > { %v613_v18 = vpop.f32.mrb[0].mxu0 }
  0xfb   : > { %v614_v19 = vpop.f32.mrb[1].mxu0 }
  0xfc   : > { %v615_v20 = vadd.f32 %v614_v19, %v613_v18  ;;  %v616_v21 = vpop.f32.mrb[2].mxu0 }
  0xfd   : > { %v617_v22 = vpop.f32.mrb[3].mxu0 }
  0xfe   : > { %v618_v23 = vadd.f32 %v617_v22, %v616_v21  ;;  %v432_v24 = vmul.f32 %v615_v20, %v615_v20 }
 0x100   : > { %v424_v25 = vadd.f32 %v618_v23, %v615_v20  ;;  %v433_v26 = vmul.f32 %v618_v23, %v618_v23  ;;  %v595_v27 = vpack.c.bf16 %v618_v23, %v615_v20 }
 0x102   : > { %v425_v28 = vrot.slane %v424_v25, 4  ;;  %v434_v29 = vadd.f32 %v433_v26, %v432_v24  ;;  %596 = vst [vmem:[%s210_s7] sm:$0xff] %v595_v27  }
 0x104   : > { %v426_v30 = vadd.f32 %v425_v28, %v424_v25  ;;  %v435_v31 = vrot.slane %v434_v29, 4 }
 0x106   : > { %v427_v32 = vrot.slane %v426_v30, 2  ;;  %v436_v33 = vadd.f32 %v435_v31, %v434_v29 }
 0x108   : > { %v428_v34 = vadd.f32 %v427_v32, %v426_v30  ;;  %v437_v35 = vrot.slane %v436_v33, 2 }
 0x10a   : > { %v429_v36 = vrot.slane %v428_v34, 1  ;;  %v438_v37 = vadd.f32 %v437_v35, %v436_v33 }
 0x10c   : > { %v430_v38 = vadd.f32 %v429_v36, %v428_v34  ;;  %v439_v39 = vrot.slane %v438_v37, 1 }
 0x10e   : > { %431 = vst [vmem:[%s215_s10] sm:$0x1] %v430_v38  ;;  %v440_v40 = vadd.f32 %v439_v39, %v438_v37 }
 0x110   : > { %441 = vst [vmem:[%s215_s10 + $0x1] sm:$0x1] %v440_v40 }
 0x111 PF: > { %s14_s14 = sadd.s32 1, %s684_s14   ;;  %s803_s12 = smov %s680_s13 }
 0x112   : > { %p11_p6 = scmp.ge.s32.totalorder %s14_s14, 4   ;;  %s804_s13 = smov %s806_s15 }
 0x114   :  { %13 = sbr.rel (!%p11_p6) target bundleno = 2 (0x2), region = 83 }

// kernel: _lambda_.8
= control target key start
LH: loop header
LB: loop body
LE: loop exit
PB: predicated region body
PF: predicated region fallthrough
CT: control target
= control target key end

     0   :  { %s946_s12 = smov 0   ;;  %s948_s13 = smov 0   ;;  %s1087_s0 = inlined_call_operand.vmem [shape: bf16[32,512], index: 0, kind: input, shape index: {}]   ;;  %s1088_s1 = inlined_call_operand.vmem [shape: bf16[512,128], index: 1, kind: input, shape index: {}]   ;;  %s1089_s2 = inlined_call_operand.vmem [shape: bf16[32,128], index: 2, kind: output, shape index: {0}]   ;;  %s1090_s3 = inlined_call_operand.vmem [shape: f32[2,2,128], index: 3, kind: output, shape index: {1}]  }
   0x1   :  { %s950_s14 = smov 0  }
   0x2 LB: > { %s26_s15 = sadd.s32 1, %s920_s13  ;;  %p741_p0 = scmp.ge.s32.totalorder %s924_s14, 1  ;;  %s924_s14 = sphi %s950_s14, %s14_s14   ;;  %s920_s13 = sphi %s948_s13, %s1092_s13   ;;  %s916_s12 = sphi %s946_s12, %s1091_s12  }
   0x3   : > { %p28_p1 = scmp.ge.s32.totalorder %s26_s15, 2  ;;  %p161_p2 = scmp.lt.s32.totalorder %s924_s14, 3 }
   0x5   : > { %s1094_s15 = smov (%p28_p1, %s26_s15), 0  ;;  %p162_p3 = pnand %p741_p0, %p161_p2 }
   0x6   : > { %v864_v0 = vld [vmem:[%s1088_s1 + $0x40] sm:$0xff] (!%p162_p3)   ;;  %v868_v4 = vld [vmem:[%s1088_s1 + $0x48] sm:$0xff] (!%p162_p3)   ;;  %v872_v8 = vld [vmem:[%s1088_s1 + $0x50] sm:$0xff] (!%p162_p3)   ;;  %s742_s25 = sshll.u32 (!%p162_p3), %s916_s12, 1  ;;  %p212_p5 = scmp.lt.s32.totalorder (!%p162_p3), %s916_s12, 1 }
   0x7   : > { %165 = sbr.rel (%p162_p3) target bundleno = 277 (0x115), region = 28  ;;  %v865_v1 = vld [vmem:[%s1088_s1 + $0xc0] sm:$0xff] (!%p162_p3)   ;;  %796 = vmatprep.subr.bf16.mxu0 (!%p162_p3), %v864_v0  ;;  %v869_v5 = vld [vmem:[%s1088_s1 + $0xc8] sm:$0xff] (!%p162_p3)   ;;  %v873_v9 = vld [vmem:[%s1088_s1 + $0xd0] sm:$0xff] (!%p162_p3)   ;;  %p196_p4 = scmp.lt.s32.totalorder (!%p162_p3), %s742_s25, 3 }
   0x8   : > { %v866_v2 = vld [vmem:[%s1088_s1] sm:$0xff] (!%p162_p3)   ;;  %818 = vmatprep.subr.bf16.mxu1 (!%p162_p3), %v865_v1  ;;  %v870_v6 = vld [vmem:[%s1088_s1 + $0x8] sm:$0xff] (!%p162_p3)   ;;  %v874_v10 = vld [vmem:[%s1088_s1 + $0x10] sm:$0xff] (!%p162_p3)  }
   0x9   : > { %v867_v3 = vld [vmem:[%s1088_s1 + $0x80] sm:$0xff] (!%p162_p3)   ;;  %797 = vmatpush3.bf16.msra.mxu0 (!%p162_p3), %v866_v2  ;;  %v871_v7 = vld [vmem:[%s1088_s1 + $0x88] sm:$0xff] (!%p162_p3)   ;;  %v875_v11 = vld [vmem:[%s1088_s1 + $0x90] sm:$0xff] (!%p162_p3)  }
   0xa   : > { %819 = vmatpush3.bf16.msra.mxu1 (!%p162_p3), %v867_v3  ;;  %798 = vmatprep.subr.bf16.mxu0 (!%p162_p3), %v868_v4  ;;  %v876_v12 = vld [vmem:[%s1088_s1 + $0x58] sm:$0xff] (!%p162_p3)   ;;  %v880_v16 = vld [vmem:[%s1088_s1 + $0x60] sm:$0xff] (!%p162_p3)   ;;  %v884_v20 = vld [vmem:[%s1088_s1 + $0x68] sm:$0xff] (!%p162_p3)  }
   0xb   : > { %820 = vmatprep.subr.bf16.mxu1 (!%p162_p3), %v869_v5  ;;  %v877_v13 = vld [vmem:[%s1088_s1 + $0xd8] sm:$0xff] (!%p162_p3)   ;;  %v881_v17 = vld [vmem:[%s1088_s1 + $0xe0] sm:$0xff] (!%p162_p3)   ;;  %v885_v21 = vld [vmem:[%s1088_s1 + $0xe8] sm:$0xff] (!%p162_p3)  }
   0xc   : > { %v878_v14 = vld [vmem:[%s1088_s1 + $0x18] sm:$0xff] (!%p162_p3)   ;;  %v882_v18 = vld [vmem:[%s1088_s1 + $0x20] sm:$0xff] (!%p162_p3)   ;;  %v886_v22 = vld [vmem:[%s1088_s1 + $0x28] sm:$0xff] (!%p162_p3)  }
   0xd   : > { %799 = vmatpush3.bf16.msra.mxu0 (!%p162_p3), %v870_v6  ;;  %v879_v15 = vld [vmem:[%s1088_s1 + $0x98] sm:$0xff] (!%p162_p3)   ;;  %v883_v19 = vld [vmem:[%s1088_s1 + $0xa0] sm:$0xff] (!%p162_p3)   ;;  %v887_v23 = vld [vmem:[%s1088_s1 + $0xa8] sm:$0xff] (!%p162_p3)  }
   0xe   : > { %821 = vmatpush3.bf16.msra.mxu1 %v871_v7  ;;  %800 = vmatprep.subr.bf16.mxu0 %v872_v8  ;;  %s1096_s25 = smov (!%p196_p4, %s742_s25), 3  ;;  %v888_v24 = vld [vmem:[%s1088_s1 + $0x70] sm:$0xff]   ;;  %v892_v28 = vld [vmem:[%s1088_s1 + $0x78] sm:$0xff]   ;;  %s1098_s12 = smov (!%p212_p5, %s916_s12), 1 }
   0xf   : > { %822 = vmatprep.subr.bf16.mxu1 %v873_v9  ;;  %v889_v25 = vld [vmem:[%s1088_s1 + $0xf0] sm:$0xff]   ;;  %s788_s26 = sshll.u32 %s1096_s25, 4  ;;  %v893_v29 = vld [vmem:[%s1088_s1 + $0xf8] sm:$0xff]   ;;  %s746_s17 = sshll.u32 %s1096_s25, 2 }
  0x10   : > { %v890_v26 = vld [vmem:[%s1088_s1 + $0x30] sm:$0xff]   ;;  %s203_s8 = scalar_lea.vmem %s1087_s0, %s788_s26  ;;  %v894_v30 = vld [vmem:[%s1088_s1 + $0x38] sm:$0xff]   ;;  %s210_s20 = scalar_lea.vmem %s1089_s2, %s746_s17 }
  0x11   : > { %801 = vmatpush3.bf16.msra.mxu0 %v874_v10  ;;  %v891_v27 = vld [vmem:[%s1088_s1 + $0xb0] sm:$0xff]   ;;  %v895_v31 = vld [vmem:[%s1088_s1 + $0xb8] sm:$0xff]   ;;  %s747_s25 = sshll.u32 %s1098_s12, 1 }
  0x12   : > { %823 = vmatpush3.bf16.msra.mxu1 %v875_v11  ;;  %802 = vmatprep.subr.bf16.mxu0 %v876_v12  ;;  %v896_v32 = vld [vmem:[%s203_s8] ss:$16 sps:$4 sm:$0xff]   ;;  %v898_v33 = vld [vmem:[%s203_s8 + $0x4] ss:$16 sps:$4 sm:$0xff]   ;;  %v899_v34 = vld [vmem:[%s203_s8 + $0x8] ss:$16 sps:$4 sm:$0xff]   ;;  %s215_s23 = scalar_lea.vmem %s1090_s3, %s747_s25 }
  0x13   : > { %824 = vmatprep.subr.bf16.mxu1 %v877_v13  ;;  %v901_v35 = vld [vmem:[%s203_s8 + $0xc] ss:$16 sps:$4 sm:$0xff]   ;;  %534 = vmatprep.mubr.bf16.mxu0 %v898_v33 }
  0x14   : > { %575 = vmatprep.mubr.bf16.mxu1 %v901_v35 }
  0x15   : > { %803 = vmatpush3.bf16.msra.mxu0 %v878_v14 }
  0x16   : > { %825 = vmatpush3.bf16.msra.mxu1 %v879_v15  ;;  %804 = vmatprep.subr.bf16.mxu0 %v880_v16 }
  0x17   : > { %826 = vmatprep.subr.bf16.mxu1 %v881_v17 }
  0x19   : > { %805 = vmatpush3.bf16.msra.mxu0 %v882_v18 }
  0x1a   : > { %827 = vmatpush3.bf16.msra.mxu1 %v883_v19  ;;  %806 = vmatprep.subr.bf16.mxu0 %v884_v20 }
  0x1b   : > { %828 = vmatprep.subr.bf16.mxu1 %v885_v21 }
  0x1d   : > { %807 = vmatpush3.bf16.msra.mxu0 %v886_v22 }
  0x1e   : > { %829 = vmatpush3.bf16.msra.mxu1 %v887_v23  ;;  %808 = vmatprep.subr.bf16.mxu0 %v888_v24 }
  0x1f   : > { %830 = vmatprep.subr.bf16.mxu1 %v889_v25 }
  0x21   : > { %809 = vmatpush3.bf16.msra.mxu0 %v890_v26 }
  0x22   : > { %831 = vmatpush3.bf16.msra.mxu1 %v891_v27  ;;  %810 = vmatprep.subr.bf16.mxu0 %v892_v28 }
  0x23   : > { %832 = vmatprep.subr.bf16.mxu1 %v893_v29 }
  0x25   : > { %811 = vmatpush3.bf16.msra.mxu0 %v894_v30 }
  0x26   : > { %833 = vmatpush3.bf16.msra.mxu1 %v895_v31 }
  0x28   : > { %535 = vmatmul.mubr.bf16.vlgmr.msra.gmra.mrb[0].mxu0 %v896_v32 }
  0x29   : > { %576 = vmatmul.mubr.bf16.vlgmr.msra.gmra.mrb[0].mxu1 %v899_v34 }
  0xfb   : > { %v812_v36 = vpop.f32.mrb[0].mxu0 }
  0xfc   : > { %v834_v37 = vpop.f32.mrb[0].mxu1  ;;  %v813_v38 = vpop.f32.mrb[1].mxu0 }
  0xfd   : > { %v814_v39 = vadd.f32 %v813_v38, %v812_v36  ;;  %v835_v40 = vpop.f32.mrb[1].mxu1  ;;  %v815_v41 = vpop.f32.mrb[2].mxu0 }
  0xfe   : > { %v836_v42 = vadd.f32 %v835_v40, %v834_v37  ;;  %v837_v43 = vpop.f32.mrb[2].mxu1  ;;  %v816_v44 = vpop.f32.mrb[3].mxu0 }
  0xff   : > { %v817_v45 = vadd.f32 %v816_v44, %v815_v41  ;;  %v838_v46 = vpop.f32.mrb[3].mxu1 }
 0x100   : > { %v578_v47 = vadd.f32 %v836_v42, %v814_v39  ;;  %v839_v48 = vadd.f32 %v838_v46, %v837_v43 }
 0x102   : > { %v581_v49 = vadd.f32 %v839_v48, %v817_v45  ;;  %v613_v50 = vmul.f32 %v578_v47, %v578_v47 }
 0x104   : > { %v605_v51 = vadd.f32 %v581_v49, %v578_v47  ;;  %v614_v52 = vmul.f32 %v581_v49, %v581_v49  ;;  %v794_v53 = vpack.c.bf16 %v581_v49, %v578_v47 }
 0x106   : > { %v606_v54 = vrot.slane %v605_v51, 4  ;;  %v615_v55 = vadd.f32 %v614_v52, %v613_v50  ;;  %795 = vst [vmem:[%s210_s20] sm:$0xff] %v794_v53  }
 0x108   : > { %v607_v56 = vadd.f32 %v606_v54, %v605_v51  ;;  %v616_v57 = vrot.slane %v615_v55, 4 }
 0x10a   : > { %v608_v58 = vrot.slane %v607_v56, 2  ;;  %v617_v59 = vadd.f32 %v616_v57, %v615_v55 }
 0x10c   : > { %v609_v60 = vadd.f32 %v608_v58, %v607_v56  ;;  %v618_v61 = vrot.slane %v617_v59, 2 }
 0x10e   : > { %v610_v62 = vrot.slane %v609_v60, 1  ;;  %v619_v63 = vadd.f32 %v618_v61, %v617_v59 }
 0x110   : > { %v611_v0 = vadd.f32 %v610_v62, %v609_v60  ;;  %v620_v1 = vrot.slane %v619_v63, 1 }
 0x112   : > { %612 = vst [vmem:[%s215_s23] sm:$0x1] %v611_v0  ;;  %v621_v2 = vadd.f32 %v620_v1, %v619_v63 }
 0x114   : > { %622 = vst [vmem:[%s215_s23 + $0x1] sm:$0x1] %v621_v2 }
 0x115 PF: > { %s14_s14 = sadd.s32 1, %s924_s14   ;;  %s1091_s12 = smov %s920_s13 }
 0x116   : > { %p11_p6 = scmp.ge.s32.totalorder %s14_s14, 4   ;;  %s1092_s13 = smov %s1094_s15 }
 0x118   :  { %13 = sbr.rel (!%p11_p6) target bundleno = 2 (0x2), region = 83 }

// kernel: _lambda_.9
= control target key start
LH: loop header
LB: loop body
LE: loop exit
PB: predicated region body
PF: predicated region fallthrough
CT: control target
= control target key end

     0   :  { %s928_s12 = smov 0   ;;  %s930_s13 = smov 0   ;;  %s1045_s0 = inlined_call_operand.vmem [shape: bf16[16,1024], index: 0, kind: input, shape index: {}]   ;;  %s1046_s1 = inlined_call_operand.vmem [shape: bf16[1024,128], index: 1, kind: input, shape index: {}]   ;;  %s1047_s2 = inlined_call_operand.vmem [shape: f32[1,128], index: 2, kind: input, shape index: {}]   ;;  %s1048_s3 = inlined_call_operand.vmem [shape: f32[16,128], index: 3, kind: output, shape index: {}]  }
   0x1   :  { %s932_s14 = smov 0   ;;  %s934_s15 = smov 0  }
   0x2   :  { %s936_s16 = smov 0  }
   0x3 LB: > { %s22_s17 = sadd.s32 1, %s902_s15  ;;  %p41_p1 = scmp.ne.s32.totalorder %s894_s13, %s890_s12  ;;  %s906_s16 = sphi %s936_s16, %s13_s16   ;;  %s902_s15 = sphi %s934_s15, %s1052_s15   ;;  %s898_s14 = sphi %s932_s14, %s1051_s14   ;;  %s894_s13 = sphi %s930_s13, %s1050_s13   ;;  %s890_s12 = sphi %s928_s12, %s1049_s12  }
   0x4   : > { %p23_p0 = scmp.ge.s32.totalorder %s22_s17, 2  ;;  %p42_p2 = scmp.eq.s32.totalorder %s906_s16, 0 }
   0x5   : > { %s34_s19 = sadd.s32 1, %s894_s13  ;;  %p693_p5 = scmp.ge.s32.totalorder %s906_s16, 2 }
   0x6   : > { %s1054_s17 = smov (%p23_p0, %s22_s17), 0  ;;  %p43_p3 = por %p42_p2, %p41_p1 }
   0x7   : > { %s30_s18 = ssub.s32 %s902_s15, %s1054_s17  ;;  %141 = sbr.rel (%p693_p5) target bundleno = 21 (0x15), region = 24 }
   0x8   : > { %p32_p4 = scmp.eq.s32.totalorder %s30_s18, 0 }
   0xa   : > { %s963_s20 = scalar_select %p32_p4, %s894_s13, %s34_s19  }
   0xe   : > { %144 = sbr.rel (!%p43_p3) target bundleno = 21 (0x15), region = 28  ;;  %s146_s21 = sand.u32 (%p43_p3), 1, %s894_s13  }
   0xf   : > { %s745_s22 = sshll.u32 (%p43_p3), %s902_s15, 4  ;;  %s694_s23 = sshll.u32 (%p43_p3), %s146_s21, 5 }
  0x10   : > { %s154_s26 = scalar_lea.vmem (%p43_p3), %s1045_s0, %s745_s22  ;;  %s148_s27 = scalar_lea.vmem (%p43_p3), [#allocation3], %s694_s23 }
  0x11   : > { %v167_v0 = vld [vmem:[%s154_s26] sm:$0xff] (%p43_p3)  ;;  %v169_v1 = vld [vmem:[%s154_s26 + $0x8] sm:$0xff] (%p43_p3) }
  0x12   : > { %v171_v2 = vld [vmem:[%s154_s26 + $0x20] sm:$0xff] (%p43_p3)  ;;  %168 = vst [vmem:[%s148_s27] sm:$0xff] (%p43_p3), %v167_v0  ;;  %170 = vst [vmem:[%s148_s27 + $0x8] sm:$0xff] (%p43_p3), %v169_v1  ;;  %v173_v3 = vld [vmem:[%s154_s26 + $0x28] sm:$0xff] (%p43_p3) }
  0x13   : > { %172 = vst [vmem:[%s148_s27 + $0x10] sm:$0xff] (%p43_p3), %v171_v2  ;;  %174 = vst [vmem:[%s148_s27 + $0x18] sm:$0xff] (%p43_p3), %v173_v3 }
  0x15 PF: > { %p697_p6 = scmp.ge.s32.totalorder %s906_s16, 1  ;;  %p179_p7 = scmp.lt.s32.totalorder %s906_s16, 3 }
  0x17   : > { %p180_p8 = pnand %p697_p6, %p179_p7 }
  0x18   : > { %s699_s28 = sshll.u32 (!%p180_p8), %s898_s14, 9  ;;  %s186_s29 = sand.u32 (!%p180_p8), 1, %s890_s12  }
  0x19   : > { %183 = sbr.rel (%p180_p8) target bundleno = 304 (0x130), region = 51  ;;  %s219_s30 = sshra.s32 (!%p180_p8), %s699_s28, 3 }
  0x1a   : > { %s698_s4 = sshll.u32 (!%p180_p8), %s186_s29, 5  ;;  %s700_s5 = sshll.u32 (!%p180_p8), %s219_s30, 2 }
  0x1b   : > { %s978_s8 = scalar_lea.vmem (!%p180_p8), %s1046_s1, %s700_s5  ;;  %s980_s9 = scalar_lea.vmem (!%p180_p8), [#allocation3], %s698_s4 }
  0x1c   : > { %v830_v4 = vld [vmem:[%s978_s8 + $0x40] sm:$0xff] (!%p180_p8)   ;;  %v834_v8 = vld [vmem:[%s978_s8 + $0x48] sm:$0xff] (!%p180_p8)   ;;  %v838_v12 = vld [vmem:[%s978_s8 + $0x50] sm:$0xff] (!%p180_p8)   ;;  %p737_p9 = scmp.ne.s32.totalorder (!%p180_p8), %s898_s14, 0 }
  0x1d   : > { %v831_v5 = vld [vmem:[%s978_s8 + $0xc0] sm:$0xff] (!%p180_p8)   ;;  %746 = vmatprep.subr.bf16.mxu0 (!%p180_p8), %v830_v4  ;;  %v835_v9 = vld [vmem:[%s978_s8 + $0xc8] sm:$0xff] (!%p180_p8)   ;;  %v839_v13 = vld [vmem:[%s978_s8 + $0xd0] sm:$0xff] (!%p180_p8)  }
  0x1e   : > { %v832_v6 = vld [vmem:[%s978_s8] sm:$0xff] (!%p180_p8)   ;;  %768 = vmatprep.subr.bf16.mxu1 (!%p180_p8), %v831_v5  ;;  %v836_v10 = vld [vmem:[%s978_s8 + $0x8] sm:$0xff] (!%p180_p8)   ;;  %v840_v14 = vld [vmem:[%s978_s8 + $0x10] sm:$0xff] (!%p180_p8)  }
  0x1f   : > { %v833_v7 = vld [vmem:[%s978_s8 + $0x80] sm:$0xff] (!%p180_p8)   ;;  %747 = vmatpush3.bf16.msra.mxu0 (!%p180_p8), %v832_v6  ;;  %v837_v11 = vld [vmem:[%s978_s8 + $0x88] sm:$0xff] (!%p180_p8)   ;;  %v841_v15 = vld [vmem:[%s978_s8 + $0x90] sm:$0xff] (!%p180_p8)  }
  0x20   : > { %769 = vmatpush3.bf16.msra.mxu1 %v833_v7  ;;  %748 = vmatprep.subr.bf16.mxu0 %v834_v8  ;;  %v842_v16 = vld [vmem:[%s978_s8 + $0x58] sm:$0xff]   ;;  %v846_v20 = vld [vmem:[%s978_s8 + $0x60] sm:$0xff]   ;;  %v850_v24 = vld [vmem:[%s978_s8 + $0x68] sm:$0xff]  }
  0x21   : > { %770 = vmatprep.subr.bf16.mxu1 %v835_v9  ;;  %v843_v17 = vld [vmem:[%s978_s8 + $0xd8] sm:$0xff]   ;;  %v847_v21 = vld [vmem:[%s978_s8 + $0xe0] sm:$0xff]   ;;  %v851_v25 = vld [vmem:[%s978_s8 + $0xe8] sm:$0xff]  }
  0x22   : > { %v844_v18 = vld [vmem:[%s978_s8 + $0x18] sm:$0xff]   ;;  %v848_v22 = vld [vmem:[%s978_s8 + $0x20] sm:$0xff]   ;;  %v852_v26 = vld [vmem:[%s978_s8 + $0x28] sm:$0xff]  }
  0x23   : > { %749 = vmatpush3.bf16.msra.mxu0 %v836_v10  ;;  %v845_v19 = vld [vmem:[%s978_s8 + $0x98] sm:$0xff]   ;;  %v849_v23 = vld [vmem:[%s978_s8 + $0xa0] sm:$0xff]   ;;  %v853_v27 = vld [vmem:[%s978_s8 + $0xa8] sm:$0xff]  }
  0x24   : > { %771 = vmatpush3.bf16.msra.mxu1 %v837_v11  ;;  %750 = vmatprep.subr.bf16.mxu0 %v838_v12  ;;  %v854_v28 = vld [vmem:[%s978_s8 + $0x70] sm:$0xff]   ;;  %v858_v32 = vld [vmem:[%s978_s8 + $0x78] sm:$0xff]   ;;  %v738_v54 = vld [vmem:[%s1047_s2] ss:$0 sm:$0xff] (!%p737_p9) }
  0x25   : > { %772 = vmatprep.subr.bf16.mxu1 %v839_v13  ;;  %v855_v29 = vld [vmem:[%s978_s8 + $0xf0] sm:$0xff]   ;;  %v859_v33 = vld [vmem:[%s978_s8 + $0xf8] sm:$0xff]  }
  0x26   : > { %v856_v30 = vld [vmem:[%s978_s8 + $0x30] sm:$0xff]   ;;  %v860_v35 = vld [vmem:[%s978_s8 + $0x38] sm:$0xff]  }
  0x27   : > { %751 = vmatpush3.bf16.msra.mxu0 %v840_v14  ;;  %v857_v31 = vld [vmem:[%s978_s8 + $0xb0] sm:$0xff]   ;;  %v861_v36 = vld [vmem:[%s978_s8 + $0xb8] sm:$0xff]  }
  0x28   : > { %773 = vmatpush3.bf16.msra.mxu1 %v841_v15  ;;  %752 = vmatprep.subr.bf16.mxu0 %v842_v16  ;;  %v862_v34 = vld [vmem:[%s980_s9] ss:$16 sps:$4 sm:$0xff]   ;;  %v864_v37 = vld [vmem:[%s980_s9 + $0x4] ss:$16 sps:$4 sm:$0xff]   ;;  %v865_v38 = vld [vmem:[%s980_s9 + $0x8] ss:$16 sps:$4 sm:$0xff]  }
  0x29   : > { %774 = vmatprep.subr.bf16.mxu1 %v843_v17  ;;  %v867_v39 = vld [vmem:[%s980_s9 + $0xc] ss:$16 sps:$4 sm:$0xff]   ;;  %535 = vmatprep.mubr.bf16.mxu0 %v864_v37 }
  0x2a   : > { %576 = vmatprep.mubr.bf16.mxu1 %v867_v39 }
  0x2b   : > { %753 = vmatpush3.bf16.msra.mxu0 %v844_v18 }
  0x2c   : > { %775 = vmatpush3.bf16.msra.mxu1 %v845_v19  ;;  %754 = vmatprep.subr.bf16.mxu0 %v846_v20 }
  0x2d   : > { %776 = vmatprep.subr.bf16.mxu1 %v847_v21 }
  0x2f   : > { %755 = vmatpush3.bf16.msra.mxu0 %v848_v22 }
  0x30   : > { %777 = vmatpush3.bf16.msra.mxu1 %v849_v23  ;;  %756 = vmatprep.subr.bf16.mxu0 %v850_v24 }
  0x31   : > { %778 = vmatprep.subr.bf16.mxu1 %v851_v25 }
  0x33   : > { %757 = vmatpush3.bf16.msra.mxu0 %v852_v26 }
  0x34   : > { %779 = vmatpush3.bf16.msra.mxu1 %v853_v27  ;;  %758 = vmatprep.subr.bf16.mxu0 %v854_v28 }
  0x35   : > { %780 = vmatprep.subr.bf16.mxu1 %v855_v29 }
  0x37   : > { %759 = vmatpush3.bf16.msra.mxu0 %v856_v30 }
  0x38   : > { %781 = vmatpush3.bf16.msra.mxu1 %v857_v31  ;;  %760 = vmatprep.subr.bf16.mxu0 %v858_v32 }
  0x39   : > { %782 = vmatprep.subr.bf16.mxu1 %v859_v33 }
  0x3b   : > { %761 = vmatpush3.bf16.msra.mxu0 %v860_v35 }
  0x3c   : > { %783 = vmatpush3.bf16.msra.mxu1 %v861_v36 }
  0x3e   : > { %536 = vmatmul.mubr.bf16.vlgmr.msra.gmra.mrb[0].mxu0 %v862_v34 }
  0x3f   : > { %577 = vmatmul.mubr.bf16.vlgmr.msra.gmra.mrb[0].mxu1 %v865_v38 }
 0x111   : > { %v762_v40 = vpop.f32.mrb[0].mxu0 }
 0x112   : > { %v784_v41 = vpop.f32.mrb[0].mxu1  ;;  %v763_v42 = vpop.f32.mrb[1].mxu0  ;;  %588 = sbr.rel (%p737_p9) target bundleno = 285 (0x11d), region = 59 }
 0x113   : > { %v764_v43 = vadd.f32 %v763_v42, %v762_v40  ;;  %v785_v44 = vpop.f32.mrb[1].mxu1  ;;  %v765_v45 = vpop.f32.mrb[2].mxu0 }
 0x114   : > { %v786_v46 = vadd.f32 %v785_v44, %v784_v41  ;;  %v787_v47 = vpop.f32.mrb[2].mxu1  ;;  %v766_v48 = vpop.f32.mrb[3].mxu0 }
 0x115   : > { %v767_v49 = vadd.f32 %v766_v48, %v765_v45  ;;  %v788_v50 = vpop.f32.mrb[3].mxu1 }
 0x116   : > { %v579_v51 = vadd.f32 %v786_v46, %v764_v43  ;;  %v789_v52 = vadd.f32 %v788_v50, %v787_v47 }
 0x118   : > { %v582_v53 = vadd.f32 %v789_v52, %v767_v49  ;;  %v596_v55 = vadd.f32 (!%p737_p9), %v738_v54, %v579_v51 }
 0x11a   : > { %v597_v56 = vadd.f32 %v738_v54, %v582_v53  ;;  %598 = vst [vmem:[#allocation2] sm:$0xff] %v596_v55 }
 0x11c   : > { %599 = vst [vmem:[#allocation2 + $0x8] sm:$0xff] %v597_v56 }
 0x11d PF: > { %p739_p10 = scmp.le.s32.totalorder %s898_s14, 0 }
 0x11f   : > { %603 = sbr.rel (%p739_p10) target bundleno = 295 (0x127), region = 63 }
 0x121   : > { %v604_v57 = vld [vmem:[#allocation2] sm:$0xff] (!%p739_p10) }
 0x122   : > { %v606_v59 = vadd.f32 (!%p739_p10), %v604_v57, %v579_v51 }
 0x123   : > { %v605_v58 = vld [vmem:[#allocation2 + $0x8] sm:$0xff] (!%p739_p10) }
 0x124   : > { %v607_v60 = vadd.f32 (!%p739_p10), %v605_v58, %v582_v53  ;;  %608 = vst [vmem:[#allocation2] sm:$0xff] (!%p739_p10), %v606_v59 }
 0x126   : > { %609 = vst [vmem:[#allocation2 + $0x8] sm:$0xff] %v607_v60 }
 0x127 PF: > { %p740_p11 = scmp.ne.s32.totalorder %s898_s14, 1 }
 0x129   : > { %613 = sbr.rel (%p740_p11) target bundleno = 304 (0x130), region = 67 }
 0x12c   : > { %v614_v61 = vld [vmem:[#allocation2] sm:$0xff] (!%p740_p11) }
 0x12d   : > { %v615_v62 = vld [vmem:[#allocation2 + $0x8] sm:$0xff] (!%p740_p11)  ;;  %616 = vst [vmem:[%s1048_s3] sm:$0xff] (!%p740_p11), %v614_v61 }
 0x12e   : > { %617 = vst [vmem:[%s1048_s3 + $0x8] sm:$0xff] (!%p740_p11), %v615_v62 }
 0x130 PF: > { %s13_s16 = sadd.s32 1, %s906_s16   ;;  %s1049_s12 = smov %s894_s13 }
 0x131   : > { %p10_p12 = scmp.ge.s32.totalorder %s13_s16, 4   ;;  %s1050_s13 = smov %s963_s20 }
 0x132   : > { %s1051_s14 = smov %s902_s15  ;;  %s1052_s15 = smov %s1054_s17 }
 0x133   :  { %12 = sbr.rel (!%p10_p12) target bundleno = 3 (0x3), region = 103 }

</bundles_post_ra>
